<compile_context>
chip_gen: v7x
topology: tpu7x:2x2x1
jax: 0.10.0
libtpu: 0.0.40
codegen_flags: <defaults>
</compile_context>

<pallas_src>
import functools

import jax
import jax.numpy as jnp
from jax import lax
from jax.experimental import pallas as pl
from jax.experimental.pallas import tpu as pltpu


def _bottleneck_kernel(x_ref, s1_ref, b1_ref, w1_ref, b2_ref, w2_ref, o_ref, pad_ref,
                       *, h, w, c4, cg):
    # x_ref:   (1, H, W, Cin)   one image per grid step (f32)
    # s1/b1:   (1, Cin)         folded eval-mode BN1 scale / bias (f32)
    # w1:      (Cin, C4)        1x1 conv weights with BN2 scale pre-folded (bf16)
    # b2:      (1, C4)          folded BN2 bias (f32)
    # w2:      (9, C4, Cg)      3x3 conv weights, one (C4, Cg) slab per tap (bf16)
    # o_ref:   (1, H, W, Cg+Cin) fused [conv2_out, x] output (f32)
    # pad_ref: (H+2, W+2, C4)   VMEM scratch holding the zero-padded BN2/ReLU activation
    hw = h * w

    x = x_ref[0]                                                    # (H, W, Cin) f32

    # BN1 (inference, folded) + ReLU in f32; cast only the matmul operand to bf16.
    a = jnp.maximum(x * s1_ref[...] + b1_ref[...], 0.0)
    a2 = a.reshape(hw, x.shape[-1]).astype(jnp.bfloat16)

    # 1x1 conv on the MXU (BN2 scale already folded into w1), then BN2 bias + ReLU.
    h1 = jnp.dot(a2, w1_ref[...], preferred_element_type=jnp.float32)   # (HW, C4) f32
    h1 = jnp.maximum(h1 + b2_ref[...], 0.0)

    # Zero-padded activation in a VMEM scratch (no register-level concat relayouts).
    # Zeroing the whole scratch is negligible here; at production shapes zero only the
    # 1-pixel border.
    pad_ref[...] = jnp.zeros((h + 2, w + 2, c4), jnp.bfloat16)
    pad_ref[1:h + 1, 1:w + 1, :] = h1.reshape(h, w, c4).astype(jnp.bfloat16)

    # 3x3 conv, padding=1: nine shifted (HW, C4) x (C4, Cg) dots accumulated in f32
    # (no (HW, 9*C4) im2col buffer).
    acc = jnp.zeros((hw, cg), jnp.float32)
    for t, (dy, dx) in enumerate((dy, dx) for dy in range(3) for dx in range(3)):
        patch = pad_ref[dy:dy + h, dx:dx + w, :].reshape(hw, c4)        # bf16
        acc = acc + jnp.dot(patch, w2_ref[t], preferred_element_type=jnp.float32)

    # Fused torch.cat([conv2_out, x], channel): single store of the whole output block.
    out = jnp.concatenate([acc.reshape(h, w, cg), x], axis=-1)          # (H, W, Cg+Cin)
    o_ref[0] = out.astype(o_ref.dtype)


def bottleneck_forward(x_nhwc, s1, b1, w1, s2, b2, w2_hwio):
    """x_nhwc: (N,H,W,Cin); s*/b*: (C,); w1: (Cin,C4); w2_hwio: (3,3,C4,Cg)."""
    N, H, W, Cin = x_nhwc.shape
    C4 = w1.shape[1]
    Cg = w2_hwio.shape[3]
    Cout = Cg + Cin

    # Wrapper-side prep: exact algebraic folding + bf16 weight cast (free layout plumbing).
    w1_folded = (w1 * s2.reshape(1, C4)).astype(jnp.bfloat16)   # fold BN2 scale into conv1
    w2_taps = w2_hwio.reshape(9, C4, Cg).astype(jnp.bfloat16)   # tap-major (dy, dx) order

    kernel = functools.partial(_bottleneck_kernel, h=H, w=W, c4=C4, cg=Cg)

    flops = 2 * N * H * W * (Cin * C4 + 9 * C4 * Cg)
    bytes_accessed = (4 * N * H * W * (Cin + Cout)          # x in + fused out
                      + 4 * (2 * Cin + C4)                   # folded BN params
                      + 2 * (Cin * C4 + 9 * C4 * Cg))        # bf16 weights

    # Per-step VMEM footprint (x block, out block, weights, padded scratch, h1 headroom),
    # x4 for double-buffering + compiler slack, floored/capped to generation-safe limits.
    per_step_bytes = (4 * H * W * (Cin + Cout)
                      + 4 * (2 * Cin + C4)
                      + 2 * (Cin * C4 + 9 * C4 * Cg)
                      + 2 * (H + 2) * (W + 2) * C4
                      + 4 * H * W * C4)
    vmem_limit = int(min(max(4 * per_step_bytes + (4 << 20), 16 << 20), 64 << 20))

    out = pl.pallas_call(
        kernel,
        out_shape=jax.ShapeDtypeStruct((N, H, W, Cout), jnp.float32),
        grid_spec=pltpu.PrefetchScalarGridSpec(
            num_scalar_prefetch=0,
            grid=(N,),
            in_specs=[
                pl.BlockSpec((1, H, W, Cin), lambda n: (n, 0, 0, 0)),
                # Constant index_maps: weights/biases stay resident across grid steps.
                pl.BlockSpec((1, Cin), lambda n: (0, 0)),
                pl.BlockSpec((1, Cin), lambda n: (0, 0)),
                pl.BlockSpec((Cin, C4), lambda n: (0, 0)),
                pl.BlockSpec((1, C4), lambda n: (0, 0)),
                pl.BlockSpec((9, C4, Cg), lambda n: (0, 0, 0)),
            ],
            out_specs=pl.BlockSpec((1, H, W, Cout), lambda n: (n, 0, 0, 0)),
            scratch_shapes=[pltpu.VMEM((H + 2, W + 2, C4), jnp.bfloat16)],
        ),
        compiler_params=pltpu.CompilerParams(
            dimension_semantics=("parallel",),
            vmem_limit_bytes=vmem_limit,
        ),
        cost_estimate=pl.CostEstimate(flops=flops, transcendentals=0,
                                      bytes_accessed=bytes_accessed),
    )(x_nhwc, s1.reshape(1, Cin), b1.reshape(1, Cin), w1_folded,
      b2.reshape(1, C4), w2_taps)
    return out


def reference_forward(x_nhwc, s1, b1, w1, s2, b2, w2):
    """Pure-JAX f32 reference using lax.conv (NHWC / HWIO)."""
    Cin = x_nhwc.shape[-1]
    C4 = w1.shape[1]
    h = jnp.maximum(x_nhwc * s1.reshape(1, 1, 1, Cin) + b1.reshape(1, 1, 1, Cin), 0.0)
    h = lax.conv_general_dilated(
        h, w1.reshape(1, 1, Cin, C4), window_strides=(1, 1), padding="VALID",
        dimension_numbers=("NHWC", "HWIO", "NHWC"))
    h = jnp.maximum(h * s2.reshape(1, 1, 1, C4) + b2.reshape(1, 1, 1, C4), 0.0)
    h = lax.conv_general_dilated(
        h, w2, window_strides=(1, 1), padding=((1, 1), (1, 1)),
        dimension_numbers=("NHWC", "HWIO", "NHWC"))
    return jnp.concatenate([h, x_nhwc], axis=-1)


if __name__ == "__main__":
    # Small shapes consistent with the module: N=2, in_planes=12, growth_rate=8, 8x8 spatial.
    N, H, W = 2, 8, 8
    in_planes, growth_rate = 12, 8
    C4 = 4 * growth_rate
    eps = 1e-5

    key = jax.random.PRNGKey(0)
    ks = jax.random.split(key, 12)

    # Input (NHWC).
    x = jax.random.normal(ks[0], (N, H, W, in_planes), jnp.float32)

    # BatchNorm2d(in_planes) parameters + running stats (deterministic, non-trivial).
    g1 = 1.0 + 0.1 * jax.random.normal(ks[1], (in_planes,), jnp.float32)
    beta1 = 0.1 * jax.random.normal(ks[2], (in_planes,), jnp.float32)
    rm1 = 0.1 * jax.random.normal(ks[3], (in_planes,), jnp.float32)
    rv1 = 1.0 + 0.1 * jax.random.uniform(ks[4], (in_planes,), jnp.float32)

    # Conv2d(in_planes, 4*growth_rate, 1, bias=False) -> weight (Cin, C4) for matmul.
    bound1 = 1.0 / jnp.sqrt(in_planes)
    w1 = jax.random.uniform(ks[5], (in_planes, C4), jnp.float32, -bound1, bound1)

    # BatchNorm2d(4*growth_rate).
    g2 = 1.0 + 0.1 * jax.random.normal(ks[6], (C4,), jnp.float32)
    beta2 = 0.1 * jax.random.normal(ks[7], (C4,), jnp.float32)
    rm2 = 0.1 * jax.random.normal(ks[8], (C4,), jnp.float32)
    rv2 = 1.0 + 0.1 * jax.random.uniform(ks[9], (C4,), jnp.float32)

    # Conv2d(4*growth_rate, growth_rate, 3, padding=1, bias=False) -> HWIO (3,3,C4,Cg).
    bound2 = 1.0 / jnp.sqrt(C4 * 9)
    w2 = jax.random.uniform(ks[10], (3, 3, C4, growth_rate), jnp.float32,
                            -bound2, bound2)

    # Fold eval-mode BN into per-channel scale/bias.
    s1 = g1 / jnp.sqrt(rv1 + eps)
    b1 = beta1 - rm1 * s1
    s2 = g2 / jnp.sqrt(rv2 + eps)
    b2 = beta2 - rm2 * s2

    out = bottleneck_forward(x, s1, b1, w1, s2, b2, w2)
    out = jax.block_until_ready(out)

    ref = reference_forward(x, s1, b1, w1, s2, b2, w2)
    assert out.shape == (N, H, W, growth_rate + in_planes), out.shape
    # bf16 matmul operands with f32 accumulation -> loosened tolerance vs the f32 reference.
    assert jnp.allclose(out, ref, rtol=2e-2, atol=2e-2), \
        float(jnp.max(jnp.abs(out - ref)))

    print("KERNEL_OK")
</pallas_src>

<mosaic_0001>
module attributes {stable_mosaic.version = 11 : i64} {
  func.func @_bottleneck_kernel(%arg0: i32, %arg1: memref<1x8x8x12xf32, #tpu.memory_space<vmem>>, %arg2: memref<1x12xf32, #tpu.memory_space<vmem>>, %arg3: memref<1x12xf32, #tpu.memory_space<vmem>>, %arg4: memref<12x32xbf16, #tpu.memory_space<vmem>>, %arg5: memref<1x32xf32, #tpu.memory_space<vmem>>, %arg6: memref<9x32x8xbf16, #tpu.memory_space<vmem>>, %arg7: memref<1x8x8x20xf32, #tpu.memory_space<vmem>>, %arg8: memref<10x10x32xbf16, #tpu.memory_space<vmem>>) attributes {dimension_semantics = [#tpu.dimension_semantics<parallel>], iteration_bounds = array<i64: 2>, scalar_prefetch = 0 : i64, scratch_operands = 1 : i64, tpu.core_type = #tpu.core_type<tc>, window_params = [{transform_indices = @transform_0, window_bounds = array<i64: 1, 8, 8, 12>}, {pipeline_mode = #tpu.pipeline_mode<synchronous>, transform_indices = @transform_1, window_bounds = array<i64: 1, 12>}, {pipeline_mode = #tpu.pipeline_mode<synchronous>, transform_indices = @transform_2, window_bounds = array<i64: 1, 12>}, {pipeline_mode = #tpu.pipeline_mode<synchronous>, transform_indices = @transform_3, window_bounds = array<i64: 12, 32>}, {pipeline_mode = #tpu.pipeline_mode<synchronous>, transform_indices = @transform_4, window_bounds = array<i64: 1, 32>}, {pipeline_mode = #tpu.pipeline_mode<synchronous>, transform_indices = @transform_5, window_bounds = array<i64: 9, 32, 8>}, {transform_indices = @transform_6, window_bounds = array<i64: 1, 8, 8, 20>}]} {
    %c0 = arith.constant 0 : index
    %c0_0 = arith.constant 0 : index
    %c0_1 = arith.constant 0 : index
    %c0_2 = arith.constant 0 : index
    %0 = vector.load %arg1[%c0, %c0_0, %c0_1, %c0_2] : memref<1x8x8x12xf32, #tpu.memory_space<vmem>>, vector<1x8x8x12xf32>
    %1 = vector.shape_cast %0 : vector<1x8x8x12xf32> to vector<8x8x12xf32>
    %c0_3 = arith.constant 0 : index
    %c0_4 = arith.constant 0 : index
    %2 = vector.load %arg2[%c0_3, %c0_4] : memref<1x12xf32, #tpu.memory_space<vmem>>, vector<1x12xf32>
    %3 = vector.shape_cast %2 : vector<1x12xf32> to vector<1x1x12xf32>
    %4 = vector.broadcast %3 : vector<1x1x12xf32> to vector<8x8x12xf32>
    %5 = arith.mulf %1, %4 : vector<8x8x12xf32>
    %c0_5 = arith.constant 0 : index
    %c0_6 = arith.constant 0 : index
    %6 = vector.load %arg3[%c0_5, %c0_6] : memref<1x12xf32, #tpu.memory_space<vmem>>, vector<1x12xf32>
    %7 = vector.shape_cast %6 : vector<1x12xf32> to vector<1x1x12xf32>
    %8 = vector.broadcast %7 : vector<1x1x12xf32> to vector<8x8x12xf32>
    %9 = arith.addf %5, %8 : vector<8x8x12xf32>
    %cst = arith.constant 0.000000e+00 : f32
    %10 = vector.broadcast %cst : f32 to vector<8x8x12xf32>
    %11 = arith.maximumf %9, %10 : vector<8x8x12xf32>
    %12 = vector.shape_cast %11 : vector<8x8x12xf32> to vector<64x12xf32>
    %13 = arith.truncf %12 : vector<64x12xf32> to vector<64x12xbf16>
    %c0_7 = arith.constant 0 : index
    %c0_8 = arith.constant 0 : index
    %14 = vector.load %arg4[%c0_7, %c0_8] : memref<12x32xbf16, #tpu.memory_space<vmem>>, vector<12x32xbf16>
    %cst_9 = arith.constant dense<0.000000e+00> : vector<64x32xf32>
    %15 = tpu.matmul %13, %14, %cst_9 {dimension_numbers = #tpu.dot_dimension_numbers<[1], [0], [0], [1], [0, 0, 1, 1], [], []>} : vector<64x12xbf16>, vector<12x32xbf16>, vector<64x32xf32> -> vector<64x32xf32>
    %c0_10 = arith.constant 0 : index
    %c0_11 = arith.constant 0 : index
    %16 = vector.load %arg5[%c0_10, %c0_11] : memref<1x32xf32, #tpu.memory_space<vmem>>, vector<1x32xf32>
    %17 = vector.broadcast %16 : vector<1x32xf32> to vector<64x32xf32>
    %18 = arith.addf %15, %17 : vector<64x32xf32>
    %cst_12 = arith.constant 0.000000e+00 : f32
    %19 = vector.broadcast %cst_12 : f32 to vector<64x32xf32>
    %20 = arith.maximumf %18, %19 : vector<64x32xf32>
    %cst_13 = arith.constant 0.000000e+00 : bf16
    %21 = vector.broadcast %cst_13 : bf16 to vector<10x10x32xbf16>
    %c0_14 = arith.constant 0 : index
    %c0_15 = arith.constant 0 : index
    %c0_16 = arith.constant 0 : index
    %22 = vector.load %arg8[%c0_14, %c0_15, %c0_16] : memref<10x10x32xbf16, #tpu.memory_space<vmem>>, vector<10x10x32xbf16>
    tpu.vector_store %arg8[%c0_14, %c0_15, %c0_16], %21 {strides = array<i32>} : memref<10x10x32xbf16, #tpu.memory_space<vmem>>, vector<10x10x32xbf16>,
    %23 = vector.shape_cast %20 : vector<64x32xf32> to vector<8x8x32xf32>
    %24 = arith.truncf %23 : vector<8x8x32xf32> to vector<8x8x32xbf16>
    %c1 = arith.constant 1 : index
    %c1_17 = arith.constant 1 : index
    %c0_18 = arith.constant 0 : index
    %25 = vector.load %arg8[%c1, %c1_17, %c0_18] : memref<10x10x32xbf16, #tpu.memory_space<vmem>>, vector<8x8x32xbf16>
    tpu.vector_store %arg8[%c1, %c1_17, %c0_18], %24 {strides = array<i32>} : memref<10x10x32xbf16, #tpu.memory_space<vmem>>, vector<8x8x32xbf16>,
    %cst_19 = arith.constant 0.000000e+00 : f32
    %26 = vector.broadcast %cst_19 : f32 to vector<64x8xf32>
    %c0_20 = arith.constant 0 : index
    %c0_21 = arith.constant 0 : index
    %c0_22 = arith.constant 0 : index
    %27 = vector.load %arg8[%c0_20, %c0_21, %c0_22] : memref<10x10x32xbf16, #tpu.memory_space<vmem>>, vector<8x8x32xbf16>
    %28 = vector.shape_cast %27 : vector<8x8x32xbf16> to vector<64x32xbf16>
    %c0_23 = arith.constant 0 : index
    %c0_24 = arith.constant 0 : index
    %c0_25 = arith.constant 0 : index
    %29 = vector.load %arg6[%c0_23, %c0_24, %c0_25] : memref<9x32x8xbf16, #tpu.memory_space<vmem>>, vector<1x32x8xbf16>
    %30 = vector.shape_cast %29 : vector<1x32x8xbf16> to vector<32x8xbf16>
    %cst_26 = arith.constant dense<0.000000e+00> : vector<64x8xf32>
    %31 = tpu.matmul %28, %30, %cst_26 {dimension_numbers = #tpu.dot_dimension_numbers<[1], [0], [0], [1], [0, 0, 1, 1], [], []>} : vector<64x32xbf16>, vector<32x8xbf16>, vector<64x8xf32> -> vector<64x8xf32>
    %32 = arith.addf %26, %31 : vector<64x8xf32>
    %c0_27 = arith.constant 0 : index
    %c1_28 = arith.constant 1 : index
    %c0_29 = arith.constant 0 : index
    %33 = vector.load %arg8[%c0_27, %c1_28, %c0_29] : memref<10x10x32xbf16, #tpu.memory_space<vmem>>, vector<8x8x32xbf16>
    %34 = vector.shape_cast %33 : vector<8x8x32xbf16> to vector<64x32xbf16>
    %c1_30 = arith.constant 1 : index
    %c0_31 = arith.constant 0 : index
    %c0_32 = arith.constant 0 : index
    %35 = vector.load %arg6[%c1_30, %c0_31, %c0_32] : memref<9x32x8xbf16, #tpu.memory_space<vmem>>, vector<1x32x8xbf16>
    %36 = vector.shape_cast %35 : vector<1x32x8xbf16> to vector<32x8xbf16>
    %cst_33 = arith.constant dense<0.000000e+00> : vector<64x8xf32>
    %37 = tpu.matmul %34, %36, %cst_33 {dimension_numbers = #tpu.dot_dimension_numbers<[1], [0], [0], [1], [0, 0, 1, 1], [], []>} : vector<64x32xbf16>, vector<32x8xbf16>, vector<64x8xf32> -> vector<64x8xf32>
    %38 = arith.addf %32, %37 : vector<64x8xf32>
    %c0_34 = arith.constant 0 : index
    %c2 = arith.constant 2 : index
    %c0_35 = arith.constant 0 : index
    %39 = vector.load %arg8[%c0_34, %c2, %c0_35] : memref<10x10x32xbf16, #tpu.memory_space<vmem>>, vector<8x8x32xbf16>
    %40 = vector.shape_cast %39 : vector<8x8x32xbf16> to vector<64x32xbf16>
    %c2_36 = arith.constant 2 : index
    %c0_37 = arith.constant 0 : index
    %c0_38 = arith.constant 0 : index
    %41 = vector.load %arg6[%c2_36, %c0_37, %c0_38] : memref<9x32x8xbf16, #tpu.memory_space<vmem>>, vector<1x32x8xbf16>
    %42 = vector.shape_cast %41 : vector<1x32x8xbf16> to vector<32x8xbf16>
    %cst_39 = arith.constant dense<0.000000e+00> : vector<64x8xf32>
    %43 = tpu.matmul %40, %42, %cst_39 {dimension_numbers = #tpu.dot_dimension_numbers<[1], [0], [0], [1], [0, 0, 1, 1], [], []>} : vector<64x32xbf16>, vector<32x8xbf16>, vector<64x8xf32> -> vector<64x8xf32>
    %44 = arith.addf %38, %43 : vector<64x8xf32>
    %c1_40 = arith.constant 1 : index
    %c0_41 = arith.constant 0 : index
    %c0_42 = arith.constant 0 : index
    %45 = vector.load %arg8[%c1_40, %c0_41, %c0_42] : memref<10x10x32xbf16, #tpu.memory_space<vmem>>, vector<8x8x32xbf16>
    %46 = vector.shape_cast %45 : vector<8x8x32xbf16> to vector<64x32xbf16>
    %c3 = arith.constant 3 : index
    %c0_43 = arith.constant 0 : index
    %c0_44 = arith.constant 0 : index
    %47 = vector.load %arg6[%c3, %c0_43, %c0_44] : memref<9x32x8xbf16, #tpu.memory_space<vmem>>, vector<1x32x8xbf16>
    %48 = vector.shape_cast %47 : vector<1x32x8xbf16> to vector<32x8xbf16>
    %cst_45 = arith.constant dense<0.000000e+00> : vector<64x8xf32>
    %49 = tpu.matmul %46, %48, %cst_45 {dimension_numbers = #tpu.dot_dimension_numbers<[1], [0], [0], [1], [0, 0, 1, 1], [], []>} : vector<64x32xbf16>, vector<32x8xbf16>, vector<64x8xf32> -> vector<64x8xf32>
    %50 = arith.addf %44, %49 : vector<64x8xf32>
    %c1_46 = arith.constant 1 : index
    %c1_47 = arith.constant 1 : index
    %c0_48 = arith.constant 0 : index
    %51 = vector.load %arg8[%c1_46, %c1_47, %c0_48] : memref<10x10x32xbf16, #tpu.memory_space<vmem>>, vector<8x8x32xbf16>
    %52 = vector.shape_cast %51 : vector<8x8x32xbf16> to vector<64x32xbf16>
    %c4 = arith.constant 4 : index
    %c0_49 = arith.constant 0 : index
    %c0_50 = arith.constant 0 : index
    %53 = vector.load %arg6[%c4, %c0_49, %c0_50] : memref<9x32x8xbf16, #tpu.memory_space<vmem>>, vector<1x32x8xbf16>
    %54 = vector.shape_cast %53 : vector<1x32x8xbf16> to vector<32x8xbf16>
    %cst_51 = arith.constant dense<0.000000e+00> : vector<64x8xf32>
    %55 = tpu.matmul %52, %54, %cst_51 {dimension_numbers = #tpu.dot_dimension_numbers<[1], [0], [0], [1], [0, 0, 1, 1], [], []>} : vector<64x32xbf16>, vector<32x8xbf16>, vector<64x8xf32> -> vector<64x8xf32>
    %56 = arith.addf %50, %55 : vector<64x8xf32>
    %c1_52 = arith.constant 1 : index
    %c2_53 = arith.constant 2 : index
    %c0_54 = arith.constant 0 : index
    %57 = vector.load %arg8[%c1_52, %c2_53, %c0_54] : memref<10x10x32xbf16, #tpu.memory_space<vmem>>, vector<8x8x32xbf16>
    %58 = vector.shape_cast %57 : vector<8x8x32xbf16> to vector<64x32xbf16>
    %c5 = arith.constant 5 : index
    %c0_55 = arith.constant 0 : index
    %c0_56 = arith.constant 0 : index
    %59 = vector.load %arg6[%c5, %c0_55, %c0_56] : memref<9x32x8xbf16, #tpu.memory_space<vmem>>, vector<1x32x8xbf16>
    %60 = vector.shape_cast %59 : vector<1x32x8xbf16> to vector<32x8xbf16>
    %cst_57 = arith.constant dense<0.000000e+00> : vector<64x8xf32>
    %61 = tpu.matmul %58, %60, %cst_57 {dimension_numbers = #tpu.dot_dimension_numbers<[1], [0], [0], [1], [0, 0, 1, 1], [], []>} : vector<64x32xbf16>, vector<32x8xbf16>, vector<64x8xf32> -> vector<64x8xf32>
    %62 = arith.addf %56, %61 : vector<64x8xf32>
    %c2_58 = arith.constant 2 : index
    %c0_59 = arith.constant 0 : index
    %c0_60 = arith.constant 0 : index
    %63 = vector.load %arg8[%c2_58, %c0_59, %c0_60] : memref<10x10x32xbf16, #tpu.memory_space<vmem>>, vector<8x8x32xbf16>
    %64 = vector.shape_cast %63 : vector<8x8x32xbf16> to vector<64x32xbf16>
    %c6 = arith.constant 6 : index
    %c0_61 = arith.constant 0 : index
    %c0_62 = arith.constant 0 : index
    %65 = vector.load %arg6[%c6, %c0_61, %c0_62] : memref<9x32x8xbf16, #tpu.memory_space<vmem>>, vector<1x32x8xbf16>
    %66 = vector.shape_cast %65 : vector<1x32x8xbf16> to vector<32x8xbf16>
    %cst_63 = arith.constant dense<0.000000e+00> : vector<64x8xf32>
    %67 = tpu.matmul %64, %66, %cst_63 {dimension_numbers = #tpu.dot_dimension_numbers<[1], [0], [0], [1], [0, 0, 1, 1], [], []>} : vector<64x32xbf16>, vector<32x8xbf16>, vector<64x8xf32> -> vector<64x8xf32>
    %68 = arith.addf %62, %67 : vector<64x8xf32>
    %c2_64 = arith.constant 2 : index
    %c1_65 = arith.constant 1 : index
    %c0_66 = arith.constant 0 : index
    %69 = vector.load %arg8[%c2_64, %c1_65, %c0_66] : memref<10x10x32xbf16, #tpu.memory_space<vmem>>, vector<8x8x32xbf16>
    %70 = vector.shape_cast %69 : vector<8x8x32xbf16> to vector<64x32xbf16>
    %c7 = arith.constant 7 : index
    %c0_67 = arith.constant 0 : index
    %c0_68 = arith.constant 0 : index
    %71 = vector.load %arg6[%c7, %c0_67, %c0_68] : memref<9x32x8xbf16, #tpu.memory_space<vmem>>, vector<1x32x8xbf16>
    %72 = vector.shape_cast %71 : vector<1x32x8xbf16> to vector<32x8xbf16>
    %cst_69 = arith.constant dense<0.000000e+00> : vector<64x8xf32>
    %73 = tpu.matmul %70, %72, %cst_69 {dimension_numbers = #tpu.dot_dimension_numbers<[1], [0], [0], [1], [0, 0, 1, 1], [], []>} : vector<64x32xbf16>, vector<32x8xbf16>, vector<64x8xf32> -> vector<64x8xf32>
    %74 = arith.addf %68, %73 : vector<64x8xf32>
    %c2_70 = arith.constant 2 : index
    %c2_71 = arith.constant 2 : index
    %c0_72 = arith.constant 0 : index
    %75 = vector.load %arg8[%c2_70, %c2_71, %c0_72] : memref<10x10x32xbf16, #tpu.memory_space<vmem>>, vector<8x8x32xbf16>
    %76 = vector.shape_cast %75 : vector<8x8x32xbf16> to vector<64x32xbf16>
    %c8 = arith.constant 8 : index
    %c0_73 = arith.constant 0 : index
    %c0_74 = arith.constant 0 : index
    %77 = vector.load %arg6[%c8, %c0_73, %c0_74] : memref<9x32x8xbf16, #tpu.memory_space<vmem>>, vector<1x32x8xbf16>
    %78 = vector.shape_cast %77 : vector<1x32x8xbf16> to vector<32x8xbf16>
    %cst_75 = arith.constant dense<0.000000e+00> : vector<64x8xf32>
    %79 = tpu.matmul %76, %78, %cst_75 {dimension_numbers = #tpu.dot_dimension_numbers<[1], [0], [0], [1], [0, 0, 1, 1], [], []>} : vector<64x32xbf16>, vector<32x8xbf16>, vector<64x8xf32> -> vector<64x8xf32>
    %80 = arith.addf %74, %79 : vector<64x8xf32>
    %81 = vector.shape_cast %80 : vector<64x8xf32> to vector<8x8x8xf32>
    %82 = tpu.concatenate %81, %1 in 2 : vector<8x8x8xf32>, vector<8x8x12xf32> -> vector<8x8x20xf32>
    %c0_76 = arith.constant 0 : index
    %c0_77 = arith.constant 0 : index
    %c0_78 = arith.constant 0 : index
    %c0_79 = arith.constant 0 : index
    %83 = vector.load %arg7[%c0_76, %c0_77, %c0_78, %c0_79] : memref<1x8x8x20xf32, #tpu.memory_space<vmem>>, vector<1x8x8x20xf32>
    %84 = vector.shape_cast %83 : vector<1x8x8x20xf32> to vector<8x8x20xf32>
    %85 = vector.shape_cast %82 : vector<8x8x20xf32> to vector<1x8x8x20xf32>
    tpu.vector_store %arg7[%c0_76, %c0_77, %c0_78, %c0_79], %85 {strides = array<i32>} : memref<1x8x8x20xf32, #tpu.memory_space<vmem>>, vector<1x8x8x20xf32>,
    return
  }
  func.func @transform_0(%arg0: i32) -> (i32, i32, i32, i32) {
    %c0_i32 = arith.constant 0 : i32
    %c0_i32_0 = arith.constant 0 : i32
    %c0_i32_1 = arith.constant 0 : i32
    %c0_i32_2 = arith.constant 0 : i32
    return %arg0, %c0_i32, %c0_i32_0, %c0_i32_1 : i32, i32, i32, i32
  }
  func.func @transform_1(%arg0: i32) -> (i32, i32) {
    %c0_i32 = arith.constant 0 : i32
    %c0_i32_0 = arith.constant 0 : i32
    %c0_i32_1 = arith.constant 0 : i32
    return %c0_i32, %c0_i32_0 : i32, i32
  }
  func.func @transform_2(%arg0: i32) -> (i32, i32) {
    %c0_i32 = arith.constant 0 : i32
    %c0_i32_0 = arith.constant 0 : i32
    %c0_i32_1 = arith.constant 0 : i32
    return %c0_i32, %c0_i32_0 : i32, i32
  }
  func.func @transform_3(%arg0: i32) -> (i32, i32) {
    %c0_i32 = arith.constant 0 : i32
    %c0_i32_0 = arith.constant 0 : i32
    %c0_i32_1 = arith.constant 0 : i32
    return %c0_i32, %c0_i32_0 : i32, i32
  }
  func.func @transform_4(%arg0: i32) -> (i32, i32) {
    %c0_i32 = arith.constant 0 : i32
    %c0_i32_0 = arith.constant 0 : i32
    %c0_i32_1 = arith.constant 0 : i32
    return %c0_i32, %c0_i32_0 : i32, i32
  }
  func.func @transform_5(%arg0: i32) -> (i32, i32, i32) {
    %c0_i32 = arith.constant 0 : i32
    %c0_i32_0 = arith.constant 0 : i32
    %c0_i32_1 = arith.constant 0 : i32
    %c0_i32_2 = arith.constant 0 : i32
    return %c0_i32, %c0_i32_0, %c0_i32_1 : i32, i32, i32
  }
  func.func @transform_6(%arg0: i32) -> (i32, i32, i32, i32) {
    %c0_i32 = arith.constant 0 : i32
    %c0_i32_0 = arith.constant 0 : i32
    %c0_i32_1 = arith.constant 0 : i32
    %c0_i32_2 = arith.constant 0 : i32
    return %arg0, %c0_i32, %c0_i32_0, %c0_i32_1 : i32, i32, i32, i32
  }
}

</mosaic_0001>

<bundles_post_ra>
// kernel: tpu_custom_call.1
= control target key start
LH: loop header
LB: loop body
LE: loop exit
PB: predicated region body
PF: predicated region fallthrough
CT: control target
= control target key end

     0   :  { %11 = vsyncpa [#allocation4], 0  ;;  %s3575_s0 = inlined_call_operand.vmem [shape: f32[2,8,8,12], index: 0, kind: input, shape index: {}]   ;;  %s3576_s1 = inlined_call_operand.vmem [shape: f32[1,12], index: 1, kind: input, shape index: {}]   ;;  %s3577_s2 = inlined_call_operand.vmem [shape: f32[1,12], index: 2, kind: input, shape index: {}]   ;;  %s3578_s3 = inlined_call_operand.vmem [shape: bf16[12,32], index: 3, kind: input, shape index: {}]   ;;  %s3579_s4 = inlined_call_operand.vmem [shape: f32[1,32], index: 4, kind: input, shape index: {}]   ;;  %s3580_s5 = inlined_call_operand.vmem [shape: bf16[9,32,8], index: 5, kind: input, shape index: {}]   ;;  %s3581_s6 = inlined_call_operand.hbm [shape: f32[2,8,8,20], index: 6, kind: output, shape index: {}]  }
   0x1   :  { %13 = vsyncpa [#allocation4 + $0x1], 0  ;;  %s2931_s21 = smov 0   ;;  %s2933_s22 = smov 0  }
   0x2   :  { %s2935_s23 = smov 0   ;;  %s2937_s24 = smov 0  }
   0x3 LB: > { %s2952_s25 = sadd.s32 4294967295, %s2890_s24   ;;  %s2329_s26 = sadd.s32 4294967294, %s2890_s24   ;;  %s2890_s24 = sphi %s2937_s24, %s3595_s24   ;;  %s2886_s23 = sphi %s2935_s23, %s3594_s23   ;;  %s2882_s22 = sphi %s2933_s22, %s3593_s22   ;;  %s2878_s21 = sphi %s2931_s21, %s3592_s21  }
   0x4   : > { %s2956_s27 = sadd.s32 1, %s2890_s24   ;;  %s157_s28 = sadd.s32 1, %s2886_s23 }
   0x5   : > { %s154_s29 = ssub.s32 %s2890_s24, %s2956_s27  ;;  %p167_p0 = scmp.ne.s32.totalorder %s2886_s23, %s2882_s22 }
   0x6   : > { %p155_p1 = scmp.eq.s32.totalorder %s154_s29, 0  ;;  %p168_p2 = scmp.eq.s32.totalorder %s2952_s25, 1 }
   0x7   : > { %p173_p3 = scmp.ne.s32.totalorder %s2882_s22, %s2878_s21  ;;  %p174_p4 = scmp.eq.s32.totalorder %s2329_s26, 1 }
   0x8   : > { %s2967_s30 = scalar_select %p155_p1, %s2886_s23, %s157_s28  }
   0x9   : > { %p2969_p5 = por %p168_p2, %p167_p0  ;;  %p2973_p6 = por %p174_p4, %p173_p3 }
   0xa   : > { %p2332_p7 = scmp.ge.s32.totalorder %s2890_s24, 1  ;;  %p215_p8 = scmp.lt.s32.totalorder %s2890_s24, 3 }
   0xc   : > { %p216_p9 = pnand %p2332_p7, %p215_p8 }
   0xd   : > { %v2797_v0 = vld [vmem:[%s3578_s3] sm:$0x3f] (!%p216_p9)   ;;  %vm328_vm0 = vcmask (!%p216_p9), 1045504   ;;  %p245_p10 = scmp.lt.s32.totalorder (!%p216_p9), %s2952_s25, 1  ;;  %vm315_vm1 = vcmask (!%p216_p9), 97280   ;;  %vm405_vm2 = vcmask (!%p216_p9), 257024  }
   0xe   : > { %219 = sbr.rel (%p216_p9) target bundleno = 614 (0x266), region = 44  ;;  %2754 = vmatprep.subr.msk.bf16.mxu0 (!%p216_p9), %vm328_vm0, %v2797_v0  ;;  %v330_v1 = vsel (!%p216_p9), %vm328_vm0, %v2797_v0, 0  ;;  %v2336_v2 = vld [vmem:[%s3576_s1] ss:$0 sm:$0xff] (!%p216_p9)  ;;  %vm407_vm3 = vcmask (!%p216_p9), 253952   ;;  %v2892_v40 = vmov (!%p216_p9), 0  }
   0xf   : > { %2573 = vmatpush3.bf16.msra.mxu0 (!%p216_p9), %v330_v1  ;;  %v2337_v3 = vld [vmem:[%s3577_s2] ss:$0 sm:$0xff] (!%p216_p9)  ;;  %413 = vst.msk [vmem:[#allocation2 + $0x18] sm:$0xf] (!%p216_p9), %vm405_vm2, %v2892_v40  ;;  %406 = vst.msk [vmem:[#allocation2] sm:$0xf] (!%p216_p9), %vm405_vm2, %v2892_v40 }
  0x10   : > { %414 = vst.msk [vmem:[#allocation2 + $0x1c] sm:$0x1] (!%p216_p9), %vm407_vm3, %v2892_v40  ;;  %408 = vst.msk [vmem:[#allocation2 + $0x4] sm:$0x1] (!%p216_p9), %vm407_vm3, %v2892_v40  ;;  %v2798_v41 = vld [vmem:[%s3580_s5 + $0x10] sm:$0xff] (!%p216_p9)   ;;  %v2799_v42 = vld [vmem:[%s3580_s5 + $0x40] sm:$0xff] (!%p216_p9)  }
  0x11   : > { %409 = vst.msk [vmem:[#allocation2 + $0x8] sm:$0xf] (!%p216_p9), %vm405_vm2, %v2892_v40  ;;  %411 = vst.msk [vmem:[#allocation2 + $0x10] sm:$0xf] (!%p216_p9), %vm405_vm2, %v2892_v40  ;;  %v2800_v43 = vld [vmem:[%s3580_s5 + $0x18] sm:$0xff] (!%p216_p9)   ;;  %v2801_v44 = vld [vmem:[%s3580_s5 + $0x48] sm:$0xff] (!%p216_p9)   ;;  %2582 = vmatprep.subr.bf16.mxu0 (!%p216_p9), %v2798_v41  ;;  %2630 = vmatprep.subr.bf16.mxu1 (!%p216_p9), %v2799_v42 }
  0x12   : > { %410 = vst.msk [vmem:[#allocation2 + $0xc] sm:$0x1] (!%p216_p9), %vm407_vm3, %v2892_v40  ;;  %412 = vst.msk [vmem:[#allocation2 + $0x14] sm:$0x1] (!%p216_p9), %vm407_vm3, %v2892_v40  ;;  %2631 = vmatpush3.bf16.msra.mxu1 (!%p216_p9), %v2799_v42  ;;  %v3056_v45 = vld [vmem:[%s3580_s5 + $0x50] sm:$0xff] (!%p216_p9)   ;;  %v3062_v46 = vld [vmem:[%s3580_s5] sm:$0xff] (!%p216_p9)  }
  0x13   : > { %415 = vst.msk [vmem:[#allocation2 + $0x20] sm:$0xf] (!%p216_p9), %vm405_vm2, %v2892_v40  ;;  %417 = vst.msk [vmem:[#allocation2 + $0x28] sm:$0xf] (!%p216_p9), %vm405_vm2, %v2892_v40  ;;  %2632 = vmatprep.subr.bf16.mxu1 (!%p216_p9), %v2801_v44  ;;  %v3070_v48 = vld [vmem:[%s3579_s4] ss:$0 sm:$0xff] (!%p216_p9) }
  0x14   : > { %416 = vst.msk [vmem:[#allocation2 + $0x24] sm:$0x1] (!%p216_p9), %vm407_vm3, %v2892_v40  ;;  %418 = vst.msk [vmem:[#allocation2 + $0x2c] sm:$0x1] (!%p216_p9), %vm407_vm3, %v2892_v40  ;;  %vm541_vm4 = vsmask.f32 (!%p216_p9), 7938 }
  0x15   : > { %s246_s11 = scalar_select %p245_p10, %s2952_s25, 1  ;;  %419 = vst.msk [vmem:[#allocation2 + $0x30] sm:$0xf] %vm405_vm2, %v2892_v40  ;;  %421 = vst.msk [vmem:[#allocation2 + $0x38] sm:$0xf] %vm405_vm2, %v2892_v40  ;;  %vm758_vm10 = vcmask 261120  }
  0x16   : > { %420 = vst.msk [vmem:[#allocation2 + $0x34] sm:$0x1] %vm407_vm3, %v2892_v40  ;;  %422 = vst.msk [vmem:[#allocation2 + $0x3c] sm:$0x1] %vm407_vm3, %v2892_v40  ;;  %2633 = vmatpush3.bf16.msra.mxu1 %v2801_v44  ;;  %v3065_v47 = vld [vmem:[#allocation2] sm:$0xf] }
  0x17   : > { %s2503_s14 = sshll.u32 %s246_s11, 6  ;;  %423 = vst.msk [vmem:[#allocation2 + $0x40] sm:$0xf] %vm405_vm2, %v2892_v40  ;;  %425 = vst.msk [vmem:[#allocation2 + $0x48] sm:$0xf] %vm405_vm2, %v2892_v40  ;;  %2642 = vmatprep.subr.bf16.mxu1 %v3056_v45  ;;  %v618_v49 = vshrl.u32 %v3065_v47, 16 }
  0x18   : > { %s249_s19 = scalar_lea.vmem %s3575_s0, %s2503_s14  ;;  %424 = vst.msk [vmem:[#allocation2 + $0x44] sm:$0x1] %vm407_vm3, %v2892_v40  ;;  %426 = vst.msk [vmem:[#allocation2 + $0x4c] sm:$0x1] %vm407_vm3, %v2892_v40  ;;  %v621_v50 = vshll.u32 %v3065_v47, 16  ;;  %vm969_vm12 = vcmask 1042432  }
  0x19   : > { %v2993_v4 = vld [vmem:[%s249_s19] sm:$0xff]  ;;  %v2995_v5 = vld [vmem:[%s249_s19 + $0x8] sm:$0xff]  ;;  %v2997_v6 = vld [vmem:[%s249_s19 + $0x10] sm:$0xff]  ;;  %v3077_v59 = vrot.slane %v618_v49, 4  ;;  %vm547_vm5 = vsmask.f32 256 }
  0x1a   : > { %v266_v7 = vmul.f32 %v2336_v2, %v2993_v4  ;;  %v267_v8 = vmul.f32 %v2336_v2, %v2995_v5  ;;  %v3001_v9 = vld [vmem:[%s249_s19 + $0x18] sm:$0xff]  ;;  %v268_v10 = vmul.f32 %v2336_v2, %v2997_v6  ;;  %v3004_v11 = vld [vmem:[%s249_s19 + $0x20] sm:$0xff]  ;;  %v3006_v12 = vld [vmem:[%s249_s19 + $0x28] sm:$0xff]  ;;  %v3079_v60 = vrot.slane %v621_v50, 5  ;;  %s242_s15 = sand.u32 1, %s2882_s22   ;;  %s2512_s18 = sshll.u32 %s2952_s25, 10 }
  0x1b   : > { %v269_v13 = vmul.f32 %v2336_v2, %v3001_v9  ;;  %v270_v14 = vmul.f32 %v2336_v2, %v3004_v11  ;;  %v271_v15 = vmul.f32 %v2336_v2, %v3006_v12  ;;  %v3011_v16 = vld [vmem:[%s249_s19 + $0x30] sm:$0xff]  ;;  %v3013_v17 = vld [vmem:[%s249_s19 + $0x38] sm:$0xff]  ;;  %s2893_s19 = smov 8   ;;  %vm3093_vm6 = vmand %vm405_vm2, %vm541_vm4  ;;  %vm614_vm8 = vsmask.f32 3328  ;;  %s2333_s16 = sshll.u32 %s242_s15, 6 }
  0x1c   : > { %v281_v18 = vadd.f32 %v2337_v3, %v266_v7  ;;  %v282_v19 = vadd.f32 %v2337_v3, %v267_v8  ;;  %v283_v20 = vadd.f32 %v2337_v3, %v268_v10  ;;  %v272_v21 = vmul.f32 %v2336_v2, %v3011_v16  ;;  %2211 = vrot.lane.b32.xlu0 %v2993_v4, %s2893_s19  ;;  %vm3100_vm7 = vmand %vm407_vm3, %vm547_vm5  ;;  %s3497_s17 = scalar_lea.vmem [#allocation3], %s2333_s16  ;;  %s3519_s25 = scalar_lea.hbm %s3581_s6, %s2512_s18 }
  0x1d   : > { %v284_v22 = vadd.f32 %v2337_v3, %v269_v13  ;;  %v285_v23 = vadd.f32 %v2337_v3, %v270_v14  ;;  %v286_v24 = vadd.f32 %v2337_v3, %v271_v15  ;;  %v273_v25 = vmul.f32 %v2336_v2, %v3013_v17  ;;  %2215 = vrot.lane.b32.xlu1 %v2997_v6, %s2893_s19  ;;  %v558_v15 = vld [vmem:[#allocation2 + $0x18] sm:$0xf]  ;;  %s2267_s20 = sshll.u32 %s3497_s17, 4  ;;  %s3533_s29 = scalar_lea.sflag [#allocation4], %s242_s15  ;;  %s3524_s20 = int_to_ptr.vmem [resolvable:$true] %s2267_s20 }
  0x1e   : > { %v289_v26 = vmax.f32 %v281_v18, 0.0  ;;  %v290_v27 = vmax.f32 %v282_v19, 0.0  ;;  %v291_v28 = vmax.f32 %v283_v20, 0.0  ;;  %v287_v29 = vadd.f32 %v2337_v3, %v272_v21  ;;  %v561_v18 = vld [vmem:[#allocation2 + $0x1c] sm:$0x1]  ;;  %s2828_s9 = scalar_lea.vmem %s3524_s20, 1024 }
  0x1f   : > { %v292_v30 = vmax.f32 %v284_v22, 0.0  ;;  %v293_v31 = vmax.f32 %v285_v23, 0.0  ;;  %v294_v32 = vmax.f32 %v286_v24, 0.0  ;;  %v288_v33 = vadd.f32 %v2337_v3, %v273_v25  ;;  %v3082_v3 = vld [vmem:[#allocation2 + $0x4] sm:$0x1]  ;;  %p2829_p11 = scmp.ne.s32.totalorder %s3524_s20, %s2828_s9  ;;  %s2894_s10 = smov [#allocation3]  }
  0x20   : > { %v297_v34 = vpack.c.bf16 %v290_v27, %v289_v26  ;;  %v295_v37 = vmax.f32 %v287_v29, 0.0  ;;  %v624_v10 = vor.u32 %v3079_v60, %v3077_v59  ;;  %v627_v13 = vshll.u32 %v3082_v3, 16  ;;  %v543_v25 = vld [vmem:[#allocation2 + $0x8] sm:$0xf]  ;;  %2213 = vrot.lane.b32.xlu0 %v2995_v5, %s2893_s19  ;;  %s2832_s11 = sshll.u32 %s2894_s10, 4  ;;  %s2833_s11 = int_to_ptr.vmem [resolvable:$false] %s2832_s11 }
  0x21   : > { %v298_v35 = vpack.c.bf16 %v292_v30, %v291_v28  ;;  %v299_v36 = vpack.c.bf16 %v294_v32, %v293_v31  ;;  %v296_v38 = vmax.f32 %v288_v33, 0.0  ;;  %v549_v30 = vld [vmem:[#allocation2 + $0xc] sm:$0x1]  ;;  %2217 = vrot.lane.b32.xlu1 %v3001_v9, %s2893_s19  ;;  %vm615_vm9 = vsmask.f32 7440  ;;  %p2830_p12 = pnand %p2829_p11, %p2969_p5  ;;  %s2834_s12 = scalar_lea.vmem %s2833_s11, 2048 }
  0x22   : > { %2574 = vmatprep.mubr.msk.bf16.mxu0 %vm315_vm1, %v297_v34  ;;  %vm3167_vm11 = vmor %vm614_vm8, %vm615_vm9  ;;  %vm970_vm13 = vcmask 1046532   ;;  %vm2235_vm15 = vcmask 64512   ;;  %vm2244_vm0 = vcmask 162816   ;;  %p2835_p0 = scmp.lt.s32.totalorder %s3524_s20, %s2833_s11  ;;  %p2836_p1 = scmp.lt.s32.totalorder %s2834_s12, %s2828_s9 }
  0x23   : > { %2575 = vmatmul.mubr.msk.bf16.vlgmr.msra.gmra.mrb[0].mxu0 %vm315_vm1, %v298_v35  ;;  %v300_v39 = vpack.c.bf16 %v296_v38, %v295_v37  ;;  %v564_v38 = vld [vmem:[#allocation2 + $0x20] sm:$0xf]  ;;  %vm3303_vm14 = vmor %vm969_vm12, %vm970_vm13  ;;  %p2831_p13 = pneg %p2830_p12 }
  0x24   : > { %2578 = vmatprep.mubr.msk.bf16.mxu0 %vm315_vm1, %v299_v36  ;;  %2583 = vmatpush3.bf16.msra.mxu0 %v2798_v41  ;;  %p2837_p2 = por %p2836_p1, %p2835_p0 }
  0x25   : > { %2584 = vmatprep.subr.bf16.mxu0 %v2800_v43  ;;  %2219 = vrot.lane.b32.xlu0 %v3004_v11, %s2893_s19  ;;  %v582_v11 = vld [vmem:[#allocation2 + $0x38] sm:$0xf] }
  0x26   : > { %2221 = vrot.lane.b32.xlu1 %v3006_v12, %s2893_s19  ;;  %p2838_p3 = pnand %p2837_p2, %p2831_p13 }
  0x28   : > { %2585 = vmatpush3.bf16.msra.mxu0 %v2800_v43  ;;  %v567_v43 = vld [vmem:[#allocation2 + $0x24] sm:$0x1] }
  0x29   : > { %2594 = vmatprep.subr.bf16.mxu0 %v3062_v46  ;;  %2223 = vrot.lane.b32.xlu0 %v3011_v16, %s2893_s19 }
  0x2a   : > { %2225 = vrot.lane.b32.xlu1 %v3013_v17, %s2893_s19 }
  0x2b   : > { %2579 = vmatmul.mubr.msk.bf16.gmra.mrb[4].mxu0 %vm315_vm1, %v300_v39 }
  0xf6   : > { %v2576_v51 = vpop.f32.mrb[0].mxu0 }
  0xf7   : > { %v375_v52 = vadd.f32 %v2576_v51, %v3070_v48  ;;  %v366_v53 = vpop.f32.mrb[1].mxu0 }
  0xf8   : > { %v367_v54 = vadd.f32 %v3070_v48, %v366_v53  ;;  %v2577_v55 = vpop.f32.mrb[2].mxu0 }
  0xf9   : > { %v399_v56 = vmax.f32 %v375_v52, 0.0  ;;  %v378_v57 = vadd.f32 %v2577_v55, %v3070_v48  ;;  %v369_v58 = vpop.f32.mrb[3].mxu0  ;;  %v555_v55 = vld [vmem:[#allocation2 + $0x14] sm:$0x1] }
  0xfa   : > { %v397_v61 = vmax.f32 %v367_v54, 0.0  ;;  %v370_v62 = vadd.f32 %v3070_v48, %v369_v58  ;;  %v552_v54 = vld [vmem:[#allocation2 + $0x10] sm:$0xf] }
  0xfb   : > { %v2506_v63 = vpack.c.bf16 %v399_v56, %v399_v56  ;;  %v400_v0 = vmax.f32 %v378_v57, 0.0 }
  0xfc   : > { %v2504_v1 = vpack.c.bf16 %v397_v61, %v397_v61  ;;  %v398_v2 = vmax.f32 %v370_v62, 0.0 }
  0xfd   : > { %v476_v7 = vshrl.u32 %v2506_v63, 16  ;;  %v2507_v8 = vpack.c.bf16 %v400_v0, %v400_v0  ;;  %v479_v14 = vshll.u32 %v2506_v63, 16 }
  0xfe   : > { %v460_v19 = vshrl.u32 %v2504_v1, 16  ;;  %v463_v20 = vshll.u32 %v2504_v1, 16  ;;  %v2505_v21 = vpack.c.bf16 %v398_v2, %v398_v2  ;;  %v2580_v22 = vpop.f32.mrb[4].mxu0 }
  0xff   : > { %v478_v23 = vrot.slane %v476_v7, 7  ;;  %v484_v26 = vshrl.u32 %v2507_v8, 16  ;;  %v487_v4 = vshll.u32 %v2507_v8, 16  ;;  %v391_v27 = vadd.f32 %v2580_v22, %v3070_v48  ;;  %v382_v6 = vpop.f32.mrb[5].mxu0 }
 0x100   : > { %v462_v29 = vrot.slane %v460_v19, 7  ;;  %v468_v31 = vshrl.u32 %v2505_v21, 16  ;;  %v471_v32 = vshll.u32 %v2505_v21, 16  ;;  %v383_v33 = vadd.f32 %v3070_v48, %v382_v6  ;;  %v2581_v34 = vpop.f32.mrb[6].mxu0  ;;  %v585_v21 = vld [vmem:[#allocation2 + $0x3c] sm:$0x1] }
 0x101   : > { %v481_v35 = vor.u32 %v479_v14, %v478_v23  ;;  %v482_v36 = vrot.slane %v478_v23, 4  ;;  %v486_v37 = vrot.slane %v484_v26, 7  ;;  %v403_v39 = vmax.f32 %v391_v27, 0.0  ;;  %v385_v40 = vpop.f32.mrb[7].mxu0 }
 0x102   : > { %v465_v41 = vor.u32 %v463_v20, %v462_v29  ;;  %v466_v42 = vrot.slane %v462_v29, 4  ;;  %v470_v44 = vrot.slane %v468_v31, 7  ;;  %v401_v49 = vmax.f32 %v383_v33, 0.0 }
 0x103   : > { %v559_v50 = vsel %vm3093_vm6, %v481_v35, %v558_v15  ;;  %v562_v51 = vsel %vm3100_vm7, %v482_v36, %v561_v18  ;;  %v489_v52 = vor.u32 %v487_v4, %v486_v37  ;;  %v490_v53 = vrot.slane %v486_v37, 4  ;;  %v588_v36 = vld [vmem:[#allocation2 + $0x40] sm:$0xf]  ;;  %v591_v37 = vld [vmem:[#allocation2 + $0x44] sm:$0x1] }
 0x104   : > { %560 = vst [vmem:[#allocation2 + $0x18] sm:$0xf] %v559_v50  ;;  %563 = vst [vmem:[#allocation2 + $0x1c] sm:$0x1] %v562_v51  ;;  %v544_v5 = vsel %vm3093_vm6, %v465_v41, %v543_v25  ;;  %v550_v9 = vsel %vm3100_vm7, %v466_v42, %v549_v30  ;;  %v473_v56 = vor.u32 %v471_v32, %v470_v44  ;;  %v474_v57 = vrot.slane %v470_v44, 4 }
 0x105   : > { %545 = vst [vmem:[#allocation2 + $0x8] sm:$0xf] %v544_v5  ;;  %551 = vst [vmem:[#allocation2 + $0xc] sm:$0x1] %v550_v9  ;;  %v565_v58 = vsel %vm3093_vm6, %v489_v52, %v564_v38  ;;  %v568_v61 = vsel %vm3100_vm7, %v490_v53, %v567_v43  ;;  %v2510_v62 = vpack.c.bf16 %v403_v39, %v403_v39  ;;  %v573_v25 = vld [vmem:[#allocation2 + $0x2c] sm:$0x1] }
 0x106   : > { %v2508_v63 = vpack.c.bf16 %v401_v49, %v401_v49  ;;  %566 = vst [vmem:[#allocation2 + $0x20] sm:$0xf] %v565_v58  ;;  %569 = vst [vmem:[#allocation2 + $0x24] sm:$0x1] %v568_v61  ;;  %v553_v0 = vsel %vm3093_vm6, %v473_v56, %v552_v54  ;;  %v556_v1 = vsel %vm3100_vm7, %v474_v57, %v555_v55  ;;  %v3136_v4 = vrot.slane %v624_v10, 4 }
 0x107   : > { %v394_v2 = vadd.f32 %v2581_v34, %v3070_v48  ;;  %v386_v7 = vadd.f32 %v3070_v48, %v385_v40  ;;  %554 = vst [vmem:[#allocation2 + $0x10] sm:$0xf] %v553_v0  ;;  %557 = vst [vmem:[#allocation2 + $0x14] sm:$0x1] %v556_v1  ;;  %v508_v8 = vshrl.u32 %v2510_v62, 16  ;;  %v511_v20 = vshll.u32 %v2510_v62, 16 }
 0x108   : > { %v492_v14 = vshrl.u32 %v2508_v63, 16  ;;  %v495_v23 = vshll.u32 %v2508_v63, 16  ;;  %v570_v48 = vld [vmem:[#allocation2 + $0x28] sm:$0xf]  ;;  %v3140_v27 = vrot.slane %v627_v13, 5 }
 0x109   : > { %v404_v15 = vmax.f32 %v394_v2, 0.0  ;;  %v402_v18 = vmax.f32 %v386_v7, 0.0  ;;  %v510_v19 = vrot.slane %v508_v8, 7  ;;  %v576_v38 = vld [vmem:[#allocation2 + $0x30] sm:$0xf] }
 0x10a   : > { %v494_v22 = vrot.slane %v492_v14, 7  ;;  %v579_v49 = vld [vmem:[#allocation2 + $0x34] sm:$0x1]  ;;  %v630_v14 = vsel %vm3167_vm11, %v3136_v4, %v3140_v27 }
 0x10b   : > { %v2511_v12 = vpack.c.bf16 %v404_v15, %v404_v15  ;;  %v2509_v26 = vpack.c.bf16 %v402_v18, %v402_v18  ;;  %v513_v6 = vor.u32 %v511_v20, %v510_v19  ;;  %v514_v29 = vrot.slane %v510_v19, 4  ;;  %v3144_v31 = vld [vmem:[#allocation2 + $0x18] sm:$0xf]  ;;  %v3182_v8 = vld [vmem:[#allocation2 + $0x1c] sm:$0x1] }
 0x10c   : > { %v497_v30 = vor.u32 %v495_v23, %v494_v22  ;;  %v498_v16 = vrot.slane %v494_v22, 4  ;;  %v3146_v59 = vld [vmem:[#allocation2 + $0x8] sm:$0xf]  ;;  %v3156_v39 = vld [vmem:[#allocation2 + $0xc] sm:$0x1]  ;;  %v660_v52 = vshrl.u32 %v3144_v31, 16 }
 0x10d   : > { %v516_v32 = vshrl.u32 %v2511_v12, 16  ;;  %v519_v33 = vshll.u32 %v2511_v12, 16  ;;  %v500_v34 = vshrl.u32 %v2509_v26, 16  ;;  %v503_v35 = vshll.u32 %v2509_v26, 16  ;;  %v1248_v63 = vld [vmem:[#allocation2 + $0x8] sm:$0xf] }
 0x10e   : > { %v583_v60 = vsel %vm3093_vm6, %v513_v6, %v582_v11  ;;  %v586_v10 = vsel %vm3100_vm7, %v514_v29, %v585_v21  ;;  %v571_v17 = vsel %vm3093_vm6, %v497_v30, %v570_v48  ;;  %v574_v13 = vsel %vm3100_vm7, %v498_v16, %v573_v25  ;;  %v3160_v44 = vld [vmem:[#allocation2 + $0x10] sm:$0xf]  ;;  %v3171_v56 = vld [vmem:[#allocation2 + $0x14] sm:$0x1]  ;;  %v3189_v24 = vld [vmem:[#allocation2 + $0xc] sm:$0x1] }
 0x10f   : > { %584 = vst [vmem:[#allocation2 + $0x38] sm:$0xf] %v583_v60  ;;  %587 = vst [vmem:[#allocation2 + $0x3c] sm:$0x1] %v586_v10  ;;  %v518_v40 = vrot.slane %v516_v32, 7  ;;  %v502_v41 = vrot.slane %v500_v34, 7 }
 0x110   : > { %572 = vst [vmem:[#allocation2 + $0x28] sm:$0xf] %v571_v17  ;;  %575 = vst [vmem:[#allocation2 + $0x2c] sm:$0x1] %v574_v13  ;;  %v632_v42 = vshrl.u32 %v3146_v59, 16  ;;  %v635_v43 = vshll.u32 %v3146_v59, 16 }
 0x111   : > { %v646_v50 = vshrl.u32 %v3160_v44, 16  ;;  %v649_v51 = vshll.u32 %v3160_v44, 16  ;;  %v521_v53 = vor.u32 %v519_v33, %v518_v40  ;;  %v522_v54 = vrot.slane %v518_v40, 4  ;;  %v1250_v20 = vld [vmem:[#allocation2 + $0x10] sm:$0xf] }
 0x112   : > { %v505_v55 = vor.u32 %v503_v35, %v502_v41  ;;  %v506_v5 = vrot.slane %v502_v41, 4  ;;  %v634_v57 = vrot.slane %v632_v42, 4  ;;  %v637_v58 = vrot.slane %v635_v43, 5  ;;  %v3195_v16 = vld [vmem:[#allocation2 + $0x14] sm:$0x1] }
 0x113   : > { %v641_v61 = vshll.u32 %v3156_v39, 16  ;;  %v648_v62 = vrot.slane %v646_v50, 4  ;;  %v589_v0 = vsel %vm3093_vm6, %v521_v53, %v588_v36  ;;  %v592_v1 = vsel %vm3100_vm7, %v522_v54, %v591_v37  ;;  %v1252_v17 = vld [vmem:[#allocation2 + $0x18] sm:$0xf]  ;;  %v1254_v37 = vld [vmem:[#allocation2 + $0x20] sm:$0xf] }
 0x114   : > { %v577_v2 = vsel %vm3093_vm6, %v505_v55, %v576_v38  ;;  %v580_v7 = vsel %vm3100_vm7, %v506_v5, %v579_v49  ;;  %590 = vst [vmem:[#allocation2 + $0x40] sm:$0xf] %v589_v0  ;;  %593 = vst [vmem:[#allocation2 + $0x44] sm:$0x1] %v592_v1  ;;  %v638_v11 = vor.u32 %v637_v58, %v634_v57  ;;  %v651_v15 = vrot.slane %v649_v51, 5  ;;  %v2806_v0 = vld [vmem:[%s3580_s5 + $0x8] sm:$0xff]  }
 0x115   : > { %578 = vst [vmem:[#allocation2 + $0x30] sm:$0xf] %v577_v2  ;;  %581 = vst [vmem:[#allocation2 + $0x34] sm:$0x1] %v580_v7  ;;  %v655_v18 = vshll.u32 %v3171_v56, 16  ;;  %v662_v19 = vrot.slane %v660_v52, 4 }
 0x116   : > { %v663_v28 = vshll.u32 %v3144_v31, 16  ;;  %v1265_v21 = vshrl.u32 %v1248_v63, 16  ;;  %v1268_v22 = vshll.u32 %v1248_v63, 16  ;;  %v639_v23 = vrot.slane %v638_v11, 4  ;;  %v3202_v43 = vld [vmem:[#allocation2 + $0x1c] sm:$0x1] }
 0x117   : > { %v643_v48 = vrot.slane %v641_v61, 5  ;;  %v652_v25 = vor.u32 %v651_v15, %v648_v62  ;;  %v669_v12 = vshll.u32 %v3182_v8, 16  ;;  %v657_v26 = vrot.slane %v655_v18, 5  ;;  %v3206_v55 = vld [vmem:[#allocation2 + $0x24] sm:$0x1] }
 0x118   : > { %v665_v6 = vrot.slane %v663_v28, 5  ;;  %v1267_v4 = vrot.slane %v1265_v21, 4  ;;  %v1270_v27 = vrot.slane %v1268_v22, 5  ;;  %v1274_v32 = vshll.u32 %v3189_v24, 16  ;;  %v3208_v57 = vld [vmem:[#allocation2 + $0x20] sm:$0xf] }
 0x119   : > { %v644_v29 = vsel %vm3167_vm11, %v639_v23, %v643_v48  ;;  %v653_v30 = vrot.slane %v652_v25, 4  ;;  %v1279_v33 = vshrl.u32 %v1250_v20, 16  ;;  %v1282_v10 = vshll.u32 %v1250_v20, 16  ;;  %v3216_v18 = vld [vmem:[#allocation2 + $0x28] sm:$0xf] }
 0x11a   : > { %v2356_v34 = vcombine.low %v630_v14, %v644_v29  ;;  %v666_v35 = vor.u32 %v665_v6, %v662_v19  ;;  %v1271_v60 = vor.u32 %v1270_v27, %v1267_v4  ;;  %v671_v13 = vrot.slane %v669_v12, 5  ;;  %v3218_v19 = vld [vmem:[#allocation2 + $0x24] sm:$0x1]  ;;  %v3225_v23 = vld [vmem:[#allocation2 + $0x2c] sm:$0x1] }
 0x11b   : > { %v1281_v36 = vrot.slane %v1279_v33, 4  ;;  %v658_v38 = vsel %vm3167_vm11, %v653_v30, %v657_v26  ;;  %v1284_v41 = vrot.slane %v1282_v10, 5  ;;  %v1288_v42 = vshll.u32 %v3195_v16, 16  ;;  %v3234_v27 = vld [vmem:[%s3580_s5 + $0x20] sm:$0xff]   ;;  %v3243_v10 = vld [vmem:[#allocation2 + $0x38] sm:$0xf] }
 0x11c   : > { %2586 = vmatprep.mubr.msk.bf16.mxu0 %vm758_vm10, %v2356_v34  ;;  %v667_v40 = vrot.slane %v666_v35, 4  ;;  %v1276_v49 = vrot.slane %v1274_v32, 5  ;;  %v1293_v50 = vshrl.u32 %v1252_v17, 16  ;;  %v1296_v51 = vshll.u32 %v1252_v17, 16  ;;  %v3228_v25 = vld [vmem:[#allocation2 + $0x30] sm:$0xf] }
 0x11d   : > { %v1272_v53 = vrot.slane %v1271_v60, 4  ;;  %v1285_v54 = vor.u32 %v1284_v41, %v1281_v36  ;;  %v1307_v5 = vshrl.u32 %v1254_v37, 16  ;;  %v1302_v63 = vshll.u32 %v3202_v43, 16  ;;  %v3238_v34 = vld [vmem:[#allocation2 + $0x34] sm:$0x1] }
 0x11e   : > { %v672_v52 = vsel %vm3167_vm11, %v667_v40, %v671_v13  ;;  %v1295_v61 = vrot.slane %v1293_v50, 4  ;;  %v1298_v62 = vrot.slane %v1296_v51, 5  ;;  %v1290_v2 = vrot.slane %v1288_v42, 5  ;;  %v3248_v41 = vld [vmem:[#allocation2 + $0x3c] sm:$0x1] }
 0x11f   : > { %v2357_v58 = vcombine.low %v658_v38, %v672_v52  ;;  %v1286_v1 = vrot.slane %v1285_v54, 4  ;;  %v1309_v7 = vrot.slane %v1307_v5, 4  ;;  %v1310_v14 = vshll.u32 %v1254_v37, 16  ;;  %v1256_v5 = vld [vmem:[#allocation2 + $0x28] sm:$0xf] }
 0x120   : > { %v1299_v11 = vor.u32 %v1298_v62, %v1295_v61  ;;  %v1316_v15 = vshll.u32 %v3206_v55, 16  ;;  %v674_v28 = vshrl.u32 %v3208_v57, 16  ;;  %v1277_v20 = vsel %vm3167_vm11, %v1272_v53, %v1276_v49 }
 0x121   : > { %2587 = vmatmul.mubr.msk.bf16.vlgmr.msra.gmra.mrb[8].mxu0 %vm758_vm10, %v2357_v58  ;;  %v1291_v21 = vsel %vm3167_vm11, %v1286_v1, %v1290_v2  ;;  %v1312_v22 = vrot.slane %v1310_v14, 5  ;;  %v677_v48 = vshll.u32 %v3208_v57, 16  ;;  %v1304_v6 = vrot.slane %v1302_v63, 5  ;;  %v2804_v1 = vld [vmem:[%s3580_s5 + $0x58] sm:$0xff]  }
 0x122   : > { %2595 = vmatpush3.bf16.msra.mxu0 %v3062_v46  ;;  %v2416_v12 = vcombine.low %v1277_v20, %v1291_v21  ;;  %v1300_v26 = vrot.slane %v1299_v11, 4  ;;  %v676_v4 = vrot.slane %v674_v28, 4  ;;  %v688_v32 = vshrl.u32 %v3216_v18, 16 }
 0x123   : > { %2596 = vmatprep.subr.bf16.mxu0 %v2806_v0  ;;  %v1313_v29 = vor.u32 %v1312_v22, %v1309_v7  ;;  %v679_v30 = vrot.slane %v677_v48, 5  ;;  %v691_v33 = vshll.u32 %v3216_v18, 16  ;;  %v1318_v46 = vrot.slane %v1316_v15, 5  ;;  %v3261_v15 = vld [vmem:[#allocation2 + $0x2c] sm:$0x1] }
 0x124   : > { %2634 = vmatprep.mubr.msk.bf16.mxu1 %vm758_vm10, %v2416_v12  ;;  %v683_v35 = vshll.u32 %v3218_v19, 16  ;;  %v697_v60 = vshll.u32 %v3225_v23, 16  ;;  %v702_v17 = vshrl.u32 %v3228_v25, 16  ;;  %v690_v37 = vrot.slane %v688_v32, 4 }
 0x125   : > { %v1314_v13 = vrot.slane %v1313_v29, 4  ;;  %v680_v36 = vor.u32 %v679_v30, %v676_v4  ;;  %v693_v38 = vrot.slane %v691_v33, 5  ;;  %v1305_v40 = vsel %vm3167_vm11, %v1300_v26, %v1304_v6  ;;  %v3269_v6 = vld [vmem:[#allocation2 + $0x34] sm:$0x1] }
 0x126   : > { %2597 = vmatpush3.bf16.msra.mxu0 %v2806_v0  ;;  %v704_v42 = vrot.slane %v702_v17, 4  ;;  %v705_v49 = vshll.u32 %v3228_v25, 16  ;;  %v711_v50 = vshll.u32 %v3238_v34, 16  ;;  %v716_v54 = vshrl.u32 %v3243_v10, 16  ;;  %v1258_v0 = vld [vmem:[#allocation2 + $0x30] sm:$0xf] }
 0x127   : > { %2606 = vmatprep.subr.bf16.mxu0 %v3234_v27  ;;  %v1319_v51 = vsel %vm3167_vm11, %v1314_v13, %v1318_v46  ;;  %v681_v52 = vrot.slane %v680_v36, 4  ;;  %v694_v53 = vor.u32 %v693_v38, %v690_v37  ;;  %v685_v61 = vrot.slane %v683_v35, 5  ;;  %v1260_v46 = vld [vmem:[#allocation2 + $0x38] sm:$0xf]  ;;  %v1262_v36 = vld [vmem:[#allocation2 + $0x40] sm:$0xf] }
 0x128   : > { %v2417_v58 = vcombine.low %v1305_v40, %v1319_v51  ;;  %v707_v62 = vrot.slane %v705_v49, 5  ;;  %v719_v63 = vshll.u32 %v3243_v10, 16  ;;  %v699_v7 = vrot.slane %v697_v60, 5  ;;  %v3281_v51 = vld [vmem:[#allocation2 + $0x3c] sm:$0x1] }
 0x129   : > { %v695_v2 = vrot.slane %v694_v53, 4  ;;  %v718_v14 = vrot.slane %v716_v54, 4  ;;  %v725_v11 = vshll.u32 %v3248_v41, 16  ;;  %v1321_v21 = vshrl.u32 %v1256_v5, 16 }
 0x12a   : > { %2635 = vmatmul.mubr.msk.bf16.vlgmr.msra.gmra.mrb[0].mxu1 %vm758_vm10, %v2417_v58  ;;  %v708_v28 = vor.u32 %v707_v62, %v704_v42  ;;  %v721_v20 = vrot.slane %v719_v63, 5  ;;  %v1324_v22 = vshll.u32 %v1256_v5, 16  ;;  %v686_v48 = vsel %vm3167_vm11, %v681_v52, %v685_v61  ;;  %v3285_v5 = vld [vmem:[#allocation2 + $0x44] sm:$0x1] }
 0x12b   : > { %2643 = vmatpush3.bf16.msra.mxu1 %v3056_v45  ;;  %v700_v12 = vsel %vm3167_vm11, %v695_v2, %v699_v7  ;;  %v713_v26 = vrot.slane %v711_v50, 5  ;;  %v1335_v4 = vshrl.u32 %v1258_v0, 16  ;;  %v1323_v33 = vrot.slane %v1321_v21, 4  ;;  %v3274_v45 = vld [vmem:[%s3580_s5 + $0x60] sm:$0xff]   ;;  %v1491_v2 = vld [vmem:[#allocation2 + $0x10] sm:$0xe] }
 0x12c   : > { %v2358_v29 = vcombine.low %v686_v48, %v700_v12  ;;  %v709_v30 = vrot.slane %v708_v28, 4  ;;  %v722_v32 = vor.u32 %v721_v20, %v718_v14  ;;  %2644 = vmatprep.subr.bf16.mxu1 %v2804_v1  ;;  %v727_v35 = vrot.slane %v725_v11, 5 }
 0x12d   : > { %v1326_v60 = vrot.slane %v1324_v22, 5  ;;  %v1337_v17 = vrot.slane %v1335_v4, 4  ;;  %v1338_v13 = vshll.u32 %v1258_v0, 16  ;;  %v1330_v40 = vshll.u32 %v3261_v15, 16  ;;  %v945_v22 = vld [vmem:[#allocation2] sm:$0xe] }
 0x12e   : > { %2590 = vmatprep.mubr.msk.bf16.mxu0 %vm758_vm10, %v2358_v29  ;;  %v714_v37 = vsel %vm3167_vm11, %v709_v30, %v713_v26  ;;  %v723_v38 = vrot.slane %v722_v32, 4  ;;  %v1344_v42 = vshll.u32 %v3269_v6, 16  ;;  %v1349_v52 = vshrl.u32 %v1260_v46, 16  ;;  %v1490_v29 = vld [vmem:[#allocation2 + $0x8] sm:$0xe] }
 0x12f   : > { %v1327_v49 = vor.u32 %v1326_v60, %v1323_v33  ;;  %v1340_v50 = vrot.slane %v1338_v13, 5  ;;  %v1352_v53 = vshll.u32 %v1260_v46, 16  ;;  %2645 = vmatpush3.bf16.msra.mxu1 %v2804_v1  ;;  %v1363_v58 = vshrl.u32 %v1262_v36, 16 }
 0x130   : > { %v728_v54 = vsel %vm3167_vm11, %v723_v38, %v727_v35  ;;  %2654 = vmatprep.subr.bf16.mxu1 %v3274_v45  ;;  %v1351_v0 = vrot.slane %v1349_v52, 4  ;;  %v2366_v7 = vcombine.low %v3065_v47, %v3146_v59  ;;  %v1366_v1 = vshll.u32 %v1262_v36, 16  ;;  %v946_v38 = vld [vmem:[#allocation2 + $0x8] sm:$0xe] }
 0x131   : > { %v2359_v61 = vcombine.low %v714_v37, %v728_v54  ;;  %v1328_v62 = vrot.slane %v1327_v49, 4  ;;  %v1341_v63 = vor.u32 %v1340_v50, %v1337_v17  ;;  %v1354_v14 = vrot.slane %v1352_v53, 5  ;;  %v1493_v49 = vld [vmem:[#allocation2 + $0x20] sm:$0xe]  ;;  %v1495_v50 = vld [vmem:[#allocation2 + $0x30] sm:$0xe] }
 0x132   : > { %v1365_v11 = vrot.slane %v1363_v58, 4  ;;  %v1332_v28 = vrot.slane %v1330_v40, 5  ;;  %v1346_v21 = vrot.slane %v1344_v42, 5  ;;  %v1358_v12 = vshll.u32 %v3281_v51, 16  ;;  %v2814_v53 = vld [vmem:[%s3580_s5 + $0x28] sm:$0xff]  }
 0x133   : > { %2591 = vmatmul.mubr.msk.bf16.gmra.mrb[12].mxu0 %vm758_vm10, %v2359_v61  ;;  %v1342_v20 = vrot.slane %v1341_v63, 4  ;;  %v1355_v48 = vor.u32 %v1354_v14, %v1351_v0  ;;  %v1368_v26 = vrot.slane %v1366_v1, 5  ;;  %v1372_v4 = vshll.u32 %v3285_v5, 16  ;;  %v1494_v63 = vld [vmem:[#allocation2 + $0x28] sm:$0xe]  ;;  %v3334_v1 = vld [vmem:[%s3580_s5 + $0x30] sm:$0xff]  }
 0x134   : > { %2598 = vmatprep.mubr.msk.bf16.mxu0 %vm758_vm10, %v2366_v7  ;;  %v1520_v47 = vrot.slane %v3195_v16, 5  ;;  %v1333_v59 = vsel %vm3167_vm11, %v1328_v62, %v1332_v28  ;;  %v2427_v32 = vrot.slane %v1491_v2, 9  ;;  %v1516_v60 = vrot.slane %v3189_v24, 5 }
 0x135   : > { %v1347_v30 = vsel %vm3167_vm11, %v1342_v20, %v1346_v21  ;;  %v1356_v46 = vrot.slane %v1355_v48, 4  ;;  %v1369_v35 = vor.u32 %v1368_v26, %v1365_v11  ;;  %v2426_v17 = vrot.slane %v1490_v29, 9  ;;  %v948_v26 = vld [vmem:[#allocation2 + $0x18] sm:$0xe]  ;;  %v2812_v29 = vld [vmem:[%s3580_s5 + $0x68] sm:$0xff]  }
 0x136   : > { %v2418_v33 = vcombine.low %v1333_v59, %v1347_v30  ;;  %v1360_v13 = vrot.slane %v1358_v12, 5  ;;  %v1374_v37 = vrot.slane %v1372_v4, 5  ;;  %v2376_v40 = vrot.slane %v945_v22, 9  ;;  %v950_v22 = vld [vmem:[#allocation2 + $0x28] sm:$0xe] }
 0x137   : > { %v1370_v36 = vrot.slane %v1369_v35, 4  ;;  %v1521_v42 = vsel %vm3303_vm14, %v2427_v32, %v1520_v47  ;;  %v2367_v24 = vcombine.low %v3160_v44, %v3144_v31  ;;  %v974_v52 = vrot.slane %v3082_v3, 5  ;;  %v1492_v31 = vld [vmem:[#allocation2 + $0x18] sm:$0xe]  ;;  %v1497_v12 = vld [vmem:[#allocation2 + $0x40] sm:$0xe] }
 0x138   : > { %2638 = vmatprep.mubr.msk.bf16.mxu1 %vm758_vm10, %v2418_v33  ;;  %v1528_v54 = vrot.slane %v3206_v55, 5  ;;  %v1361_v58 = vsel %vm3167_vm11, %v1356_v46, %v1360_v13  ;;  %v2368_v62 = vcombine.low %v3208_v57, %v3216_v18  ;;  %v1517_v3 = vsel %vm3303_vm14, %v2426_v17, %v1516_v60  ;;  %v949_v32 = vld [vmem:[#allocation2 + $0x20] sm:$0xe] }
 0x139   : > { %v1375_v61 = vsel %vm3167_vm11, %v1370_v36, %v1374_v37  ;;  %v2377_v0 = vrot.slane %v946_v38, 9  ;;  %v978_v55 = vrot.slane %v3156_v39, 5  ;;  %v2438_v2 = vcombine.low %v1517_v3, %v1521_v42  ;;  %v1791_v42 = vld [vmem:[#allocation2 + $0x10] sm:$0xf] }
 0x13a   : > { %v2419_v44 = vcombine.low %v1361_v58, %v1375_v61  ;;  %v2429_v7 = vrot.slane %v1493_v49, 9  ;;  %v2431_v14 = vrot.slane %v1495_v50, 9  ;;  %v1536_v11 = vrot.slane %v3269_v6, 5  ;;  %v2822_v58 = vld [vmem:[%s3580_s5 + $0x38] sm:$0xff]  }
 0x13b   : > { %2599 = vmatmul.mubr.msk.bf16.vlgmr.msra.gmra.mrb[8].mxu0 %vm758_vm10, %v2367_v24  ;;  %v1524_v57 = vrot.slane %v3202_v43, 5  ;;  %v2428_v18 = vrot.slane %v1492_v31, 9  ;;  %v2430_v39 = vrot.slane %v1494_v63, 9  ;;  %v1532_v28 = vrot.slane %v3261_v15, 5  ;;  %v1793_v24 = vld [vmem:[#allocation2 + $0x18] sm:$0xf] }
 0x13c   : > { %2602 = vmatprep.mubr.msk.bf16.mxu0 %vm758_vm10, %v2368_v62  ;;  %2607 = vmatpush3.bf16.msra.mxu0 %v3234_v27  ;;  %v975_v6 = vsel %vm3303_vm14, %v2376_v40, %v974_v52  ;;  %v979_v43 = vsel %vm3303_vm14, %v2377_v0, %v978_v55  ;;  %v947_v27 = vld [vmem:[#allocation2 + $0x10] sm:$0xe]  ;;  %v1529_v20 = vsel %vm3303_vm14, %v2429_v7, %v1528_v54  ;;  %v982_v30 = vrot.slane %v3171_v56, 5  ;;  %v952_v52 = vld [vmem:[#allocation2 + $0x38] sm:$0xe] }
 0x13d   : > { %2639 = vmatmul.mubr.msk.bf16.gmra.mrb[4].mxu1 %vm758_vm10, %v2419_v44  ;;  %2608 = vmatprep.subr.bf16.mxu0 %v2814_v53  ;;  %v1537_v21 = vsel %vm3303_vm14, %v2431_v14, %v1536_v11  ;;  %v1525_v48 = vsel %vm3303_vm14, %v2428_v18, %v1524_v57  ;;  %v2369_v15 = vcombine.low %v3228_v25, %v3243_v10  ;;  %v2378_v59 = vrot.slane %v947_v27, 9  ;;  %v1496_v25 = vld [vmem:[#allocation2 + $0x38] sm:$0xe]  ;;  %v1799_v18 = vld [vmem:[#allocation2 + $0x30] sm:$0xf] }
 0x13e   : > { %2646 = vmatprep.mubr.msk.bf16.mxu1 %vm758_vm10, %v2438_v2  ;;  %v1533_v4 = vsel %vm3303_vm14, %v2430_v39, %v1532_v28  ;;  %v2388_v47 = vcombine.low %v975_v6, %v979_v43  ;;  %v2439_v33 = vcombine.low %v1525_v48, %v1529_v20  ;;  %v2381_v10 = vrot.slane %v950_v22, 9  ;;  %v2813_v55 = vld [vmem:[#allocation2 + $0x10] ss:$8 sps:$4 sm:$0xff]   ;;  %v1795_v6 = vld [vmem:[#allocation2 + $0x20] sm:$0xf] }
 0x13f   : > { %v2440_v46 = vcombine.low %v1533_v4, %v1537_v21  ;;  %v994_v35 = vrot.slane %v3225_v23, 5  ;;  %v2433_v60 = vrot.slane %v1497_v12, 9  ;;  %v1544_v17 = vrot.slane %v3285_v5, 5  ;;  %v951_v5 = vld [vmem:[#allocation2 + $0x30] sm:$0xe] }
 0x140   : > { %2609 = vmatpush3.bf16.msra.mxu0 %v2814_v53  ;;  %v2379_v13 = vrot.slane %v948_v26, 9  ;;  %v986_v36 = vrot.slane %v3182_v8, 5  ;;  %v2380_v56 = vrot.slane %v949_v32, 9  ;;  %v990_v37 = vrot.slane %v3218_v19, 5  ;;  %v3372_v8 = vld [vmem:[%s3580_s5 + $0x70] sm:$0xff]  }
 0x141   : > { %2618 = vmatprep.subr.bf16.mxu0 %v3334_v1  ;;  %v2432_v38 = vrot.slane %v1496_v25, 9  ;;  %v1540_v23 = vrot.slane %v3281_v51, 5  ;;  %v983_v40 = vsel %vm3303_vm14, %v2378_v59, %v982_v30  ;;  %v995_v19 = vsel %vm3303_vm14, %v2381_v10, %v994_v35  ;;  %v3399_v43 = vld [vmem:[#allocation2 + $0x14] sm:$0x1]  ;;  %v1801_v20 = vld [vmem:[#allocation2 + $0x38] sm:$0xf] }
 0x142   : > { %v987_v51 = vsel %vm3303_vm14, %v2379_v13, %v986_v36  ;;  %v991_v50 = vsel %vm3303_vm14, %v2380_v56, %v990_v37  ;;  %v1808_v53 = vshrl.u32 %v1791_v42, 16  ;;  %v1811_v54 = vshll.u32 %v1791_v42, 16  ;;  %v1805_v12 = vld [vmem:[#allocation2 + $0x48] sm:$0xf]  ;;  %v3401_v4 = vld [vmem:[#allocation2 + $0x1c] sm:$0x1] }
 0x143   : > { %2603 = vmatmul.mubr.msk.bf16.gmra.mrb[12].mxu0 %vm758_vm10, %v2369_v15  ;;  %v2389_v49 = vcombine.low %v983_v40, %v987_v51  ;;  %v1541_v61 = vsel %vm3303_vm14, %v2432_v38, %v1540_v23  ;;  %v2390_v62 = vcombine.low %v991_v50, %v995_v19  ;;  %v2382_v31 = vrot.slane %v951_v5, 9  ;;  %v2820_v26 = vld [vmem:[#allocation2 + $0x8] ss:$8 sps:$4 sm:$0xff]   ;;  %v2819_v30 = vld [vmem:[%s3580_s5 + $0x78] sm:$0xff]   ;;  %v1803_v38 = vld [vmem:[#allocation2 + $0x40] sm:$0xf] }
 0x144   : > { %2610 = vmatprep.mubr.msk.bf16.mxu0 %vm758_vm10, %v2388_v47  ;;  %v998_v44 = vrot.slane %v3238_v34, 5  ;;  %v1822_v63 = vshrl.u32 %v1793_v24, 16  ;;  %v1825_v0 = vshll.u32 %v1793_v24, 16  ;;  %v2383_v2 = vrot.slane %v952_v52, 9  ;;  %v1797_v34 = vld [vmem:[#allocation2 + $0x28] sm:$0xf] }
 0x145   : > { %2647 = vmatmul.mubr.msk.bf16.vlgmr.msra.gmra.mrb[0].mxu1 %vm758_vm10, %v2439_v33  ;;  %v1002_v7 = vrot.slane %v3248_v41, 5  ;;  %v1810_v14 = vrot.slane %v1808_v53, 4  ;;  %v1813_v11 = vrot.slane %v1811_v54, 5  ;;  %v1853_v27 = vshll.u32 %v1797_v34, 16  ;;  %v2816_v59 = vld [vmem:[#allocation2 + $0x20] ss:$8 sps:$4 sm:$0xff]  }
 0x146   : > { %2655 = vmatpush3.bf16.msra.mxu1 %v3274_v45  ;;  %2650 = vmatprep.mubr.msk.bf16.mxu1 %vm758_vm10, %v2440_v46  ;;  %v1545_v45 = vsel %vm3303_vm14, %v2433_v60, %v1544_v17  ;;  %v999_v57 = vsel %vm3303_vm14, %v2382_v31, %v998_v44  ;;  %v1824_v39 = vrot.slane %v1822_v63, 4  ;;  %v1827_v28 = vrot.slane %v1825_v0, 5  ;;  %v2817_v10 = vld [vmem:[#allocation2 + $0x30] ss:$8 sps:$4 sm:$0xff]   ;;  %v3416_v23 = vld [vmem:[%s3580_s5 + $0x80] sm:$0xff]  }
 0x147   : > { %2656 = vmatprep.subr.bf16.mxu1 %v2812_v29  ;;  %v2441_v3 = vcombine.low %v1541_v61, %v1545_v45  ;;  %v1003_v41 = vsel %vm3303_vm14, %v2383_v2, %v1002_v7  ;;  %v1814_v22 = vor.u32 %v1813_v11, %v1810_v14  ;;  %v1864_v48 = vshrl.u32 %v1799_v18, 16  ;;  %v3418_v51 = vld [vmem:[#allocation2 + $0x2c] sm:$0x1]  ;;  %v3420_v50 = vld [vmem:[#allocation2 + $0x24] sm:$0x1] }
 0x148   : > { %v2391_v21 = vcombine.low %v999_v57, %v1003_v41  ;;  %v1867_v15 = vshll.u32 %v1799_v18, 16  ;;  %v1839_v47 = vshll.u32 %v1795_v6, 16  ;;  %v1817_v32 = vshll.u32 %v3399_v43, 16  ;;  %v3422_v52 = vld [vmem:[#allocation2 + $0x34] sm:$0x1] }
 0x149   : > { %v1828_v33 = vor.u32 %v1827_v28, %v1824_v39  ;;  %v1878_v46 = vshrl.u32 %v1801_v20, 16  ;;  %v1881_v25 = vshll.u32 %v1801_v20, 16  ;;  %v1855_v60 = vrot.slane %v1853_v27, 5  ;;  %v2821_v7 = vld [vmem:[#allocation2 + $0x40] ss:$8 sps:$4 sm:$0xff]  }
 0x14a   : > { %2657 = vmatpush3.bf16.msra.mxu1 %v2812_v29  ;;  %v1836_v29 = vshrl.u32 %v1795_v6, 16  ;;  %v1906_v17 = vshrl.u32 %v1805_v12, 16  ;;  %v1815_v13 = vrot.slane %v1814_v22, 4  ;;  %v1831_v36 = vshll.u32 %v3401_v4, 16 }
 0x14b   : > { %2611 = vmatmul.mubr.msk.bf16.vlgmr.msra.gmra.mrb[8].mxu0 %vm758_vm10, %v2389_v49  ;;  %2666 = vmatprep.subr.bf16.mxu1 %v3372_v8  ;;  %v1866_v56 = vrot.slane %v1864_v48, 4  ;;  %v1869_v37 = vrot.slane %v1867_v15, 5  ;;  %v1841_v42 = vrot.slane %v1839_v47, 5  ;;  %v1909_v19 = vshll.u32 %v1805_v12, 16  ;;  %v3439_v48 = vld [vmem:[#allocation2 + $0x44] sm:$0x1] }
 0x14c   : > { %2614 = vmatprep.mubr.msk.bf16.mxu0 %vm758_vm10, %v2390_v62  ;;  %2619 = vmatpush3.bf16.msra.mxu0 %v3334_v1  ;;  %v1850_v1 = vshrl.u32 %v1797_v34, 16  ;;  %v1838_v40 = vrot.slane %v1836_v29, 4  ;;  %v1819_v5 = vrot.slane %v1817_v32, 5  ;;  %v1829_v45 = vrot.slane %v1828_v33, 4  ;;  %v2823_v62 = vld [vmem:[#allocation2 + $0x18] ss:$8 sps:$4 sm:$0xff]  }
 0x14d   : > { %2651 = vmatmul.mubr.msk.bf16.gmra.mrb[4].mxu1 %vm758_vm10, %v2441_v3  ;;  %2620 = vmatprep.subr.bf16.mxu0 %v2822_v58  ;;  %v1880_v24 = vrot.slane %v1878_v46, 4  ;;  %v1883_v49 = vrot.slane %v1881_v25, 5  ;;  %v1892_v53 = vshrl.u32 %v1803_v38, 16  ;;  %v1895_v54 = vshll.u32 %v1803_v38, 16  ;;  %v2825_v3 = vld [vmem:[#allocation2 + $0x28] ss:$8 sps:$4 sm:$0xff]  }
 0x14e   : > { %2658 = vmatprep.mubr.msk.bf16.mxu1 %vm758_vm10, %v2813_v55  ;;  %v1852_v35 = vrot.slane %v1850_v1, 4  ;;  %v1833_v61 = vrot.slane %v1831_v36, 5  ;;  %v1870_v31 = vor.u32 %v1869_v37, %v1866_v56  ;;  %v1908_v44 = vrot.slane %v1906_v17, 4  ;;  %v3427_v55 = vld [vmem:[#allocation2 + $0x3c] sm:$0x1]  ;;  %v2827_v17 = vld [vmem:[%s3580_s5 + $0x88] sm:$0xff]  }
 0x14f   : > { %v1842_v63 = vor.u32 %v1841_v42, %v1838_v40  ;;  %v1859_v0 = vshll.u32 %v3418_v51, 16  ;;  %v1911_v2 = vrot.slane %v1909_v19, 5  ;;  %v1845_v11 = vshll.u32 %v3420_v50, 16  ;;  %v3441_v15 = vld [vmem:[#allocation2 + $0x4c] sm:$0x1] }
 0x150   : > { %2621 = vmatpush3.bf16.msra.mxu0 %v2822_v58  ;;  %v1820_v58 = vsel %vm3167_vm11, %v1815_v13, %v1819_v5  ;;  %v1834_v14 = vsel %vm3167_vm11, %v1829_v45, %v1833_v61  ;;  %v1873_v34 = vshll.u32 %v3422_v52, 16  ;;  %v1884_v57 = vor.u32 %v1883_v49, %v1880_v24  ;;  %v2826_v33 = vld [vmem:[#allocation2 + $0x38] ss:$8 sps:$4 sm:$0xff]  }
 0x151   : > { %v2466_v18 = vcombine.low %v1820_v58, %v1834_v14  ;;  %v1894_v28 = vrot.slane %v1892_v53, 4  ;;  %v1897_v6 = vrot.slane %v1895_v54, 5  ;;  %v1871_v41 = vrot.slane %v1870_v31, 4  ;;  %v2034_v38 = vld [vmem:[#allocation2 + $0x18] sm:$0xe] }
 0x152   : > { %v1887_v1 = vshll.u32 %v3427_v55, 16  ;;  %v1843_v27 = vrot.slane %v1842_v63, 4  ;;  %v1861_v20 = vrot.slane %v1859_v0, 5  ;;  %v1885_v22 = vrot.slane %v1884_v57, 4  ;;  %v2036_v53 = vld [vmem:[#allocation2 + $0x28] sm:$0xe] }
 0x153   : > { %2615 = vmatmul.mubr.msk.bf16.gmra.mrb[12].mxu0 %vm758_vm10, %v2391_v21  ;;  %v1875_v21 = vrot.slane %v1873_v34, 5  ;;  %v1912_v12 = vor.u32 %v1911_v2, %v1908_v44  ;;  %v1898_v47 = vor.u32 %v1897_v6, %v1894_v28  ;;  %v1901_v25 = vshll.u32 %v3439_v48, 16  ;;  %v2035_v58 = vld [vmem:[#allocation2 + $0x20] sm:$0xe]  ;;  %v2038_v31 = vld [vmem:[#allocation2 + $0x38] sm:$0xe] }
 0x154   : > { %2622 = vmatprep.mubr.msk.bf16.mxu0 %vm758_vm10, %v2820_v26  ;;  %v1847_v26 = vrot.slane %v1845_v11, 5  ;;  %v1889_v32 = vrot.slane %v1887_v1, 5  ;;  %v2059_v42 = vrot.slane %v3399_v43, 5  ;;  %v2477_v5 = vrot.slane %v2034_v38, 9  ;;  %v2037_v43 = vld [vmem:[#allocation2 + $0x30] sm:$0xe] }
 0x155   : > { %2659 = vmatmul.mubr.msk.bf16.vlgmr.msra.gmra.mrb[0].mxu1 %vm758_vm10, %v2816_v59  ;;  %v1915_v59 = vshll.u32 %v3441_v15, 16  ;;  %v1899_v36 = vrot.slane %v1898_v47, 4  ;;  %v1913_v56 = vrot.slane %v1912_v12, 4  ;;  %v1903_v19 = vrot.slane %v1901_v25, 5  ;;  %v2040_v14 = vld [vmem:[#allocation2 + $0x48] sm:$0xe]  ;;  %v2216_v47 = vpop.permute.xlu1 %2215 }
 0x156   : > { %2667 = vmatpush3.bf16.msra.mxu1 %v3372_v8  ;;  %2662 = vmatprep.mubr.msk.bf16.mxu1 %vm758_vm10, %v2817_v10  ;;  %v1856_v8 = vor.u32 %v1855_v60, %v1852_v35  ;;  %v1848_v46 = vsel %vm3167_vm11, %v1843_v27, %v1847_v26  ;;  %v2033_v10 = vld [vmem:[#allocation2 + $0x10] sm:$0xe]  ;;  %v1890_v60 = vsel %vm3167_vm11, %v1885_v22, %v1889_v32  ;;  %v2063_v45 = vrot.slane %v3401_v4, 5  ;;  %v2039_v11 = vld [vmem:[#allocation2 + $0x40] sm:$0xe] }
 0x157   : > { %2668 = vmatprep.subr.bf16.mxu1 %v2819_v30  ;;  %v1917_v37 = vrot.slane %v1915_v59, 5  ;;  %v2476_v40 = vrot.slane %v2033_v10, 9  ;;  %v1904_v24 = vsel %vm3167_vm11, %v1899_v36, %v1903_v19  ;;  %v2071_v4 = vrot.slane %v3418_v51, 5 }
 0x158   : > { %v1857_v39 = vrot.slane %v1856_v8, 4  ;;  %v2064_v54 = vsel %vm3303_vm14, %v2477_v5, %v2063_v45  ;;  %v2480_v9 = vrot.slane %v2037_v43, 9  ;;  %v2075_v44 = vrot.slane %v3422_v52, 5 }
 0x159   : > { %v1918_v49 = vsel %vm3167_vm11, %v1913_v56, %v1917_v37  ;;  %v2060_v8 = vsel %vm3303_vm14, %v2476_v40, %v2059_v42  ;;  %v2067_v63 = vrot.slane %v3420_v50, 5  ;;  %v2481_v0 = vrot.slane %v2038_v31, 9  ;;  %v2218_v16 = vpop.permute.xlu1 %2217 }
 0x15a   : > { %2669 = vmatpush3.bf16.msra.mxu1 %v2819_v30  ;;  %v1862_v29 = vsel %vm3167_vm11, %v1857_v39, %v1861_v20  ;;  %v1876_v30 = vsel %vm3167_vm11, %v1871_v41, %v1875_v21  ;;  %v2488_v61 = vcombine.low %v2060_v8, %v2064_v54  ;;  %v2079_v2 = vrot.slane %v3427_v55, 5 }
 0x15b   : > { %2623 = vmatmul.mubr.msk.bf16.vlgmr.msra.gmra.mrb[8].mxu0 %vm758_vm10, %v2823_v62  ;;  %2678 = vmatprep.subr.bf16.mxu1 %v3416_v23  ;;  %v2467_v35 = vcombine.low %v1848_v46, %v1862_v29  ;;  %v2468_v13 = vcombine.low %v1876_v30, %v1890_v60  ;;  %v2479_v62 = vrot.slane %v2036_v53, 9  ;;  %v2076_v51 = vsel %vm3303_vm14, %v2480_v9, %v2075_v44  ;;  %v2212_v29 = vpop.permute.xlu0 %2211 }
 0x15c   : > { %2626 = vmatprep.mubr.msk.bf16.mxu0 %vm758_vm10, %v2825_v3  ;;  %v2478_v3 = vrot.slane %v2035_v58, 9  ;;  %v2080_v57 = vsel %vm3303_vm14, %v2481_v0, %v2079_v2  ;;  %v2482_v39 = vrot.slane %v2039_v11, 9  ;;  %v2083_v55 = vrot.slane %v3439_v48, 5 }
 0x15d   : > { %2663 = vmatmul.mubr.msk.bf16.gmra.mrb[4].mxu1 %vm758_vm10, %v2821_v7  ;;  %v2072_v7 = vsel %vm3303_vm14, %v2479_v62, %v2071_v4  ;;  %v2490_v50 = vcombine.low %v2076_v51, %v2080_v57  ;;  %v2087_v28 = vrot.slane %v3441_v15, 5  ;;  %v2222_v56 = vpop.permute.xlu1 %2221 }
 0x15e   : > { %2670 = vmatprep.mubr.msk.bf16.mxu1 %vm758_vm10, %v2466_v18  ;;  %v2068_v34 = vsel %vm3303_vm14, %v2478_v3, %v2067_v63  ;;  %v2483_v18 = vrot.slane %v2040_v14, 9  ;;  %v2084_v6 = vsel %vm3303_vm14, %v2482_v39, %v2083_v55 }
 0x15f   : > { %v2489_v52 = vcombine.low %v2068_v34, %v2072_v7  ;;  %v2214_v59 = vpop.permute.xlu0 %2213 }
 0x160   : > { %v2088_v41 = vsel %vm3303_vm14, %v2483_v18, %v2087_v28 }
 0x161   : > { %v2491_v1 = vcombine.low %v2084_v6, %v2088_v41 }
 0x163   : > { %2627 = vmatmul.mubr.msk.bf16.gmra.mrb[12].mxu0 %vm758_vm10, %v2826_v33  ;;  %v2220_v10 = vpop.permute.xlu0 %2219 }
 0x165   : > { %2671 = vmatmul.mubr.msk.bf16.vlgmr.msra.gmra.mrb[0].mxu1 %vm758_vm10, %v2467_v35 }
 0x166   : > { %2679 = vmatpush3.bf16.msra.mxu1 %v3416_v23  ;;  %2674 = vmatprep.mubr.msk.bf16.mxu1 %vm758_vm10, %v2468_v13  ;;  %v2469_v23 = vcombine.low %v1904_v24, %v1918_v49  ;;  %v2226_v49 = vpop.permute.xlu1 %2225 }
 0x167   : > { %2680 = vmatprep.subr.bf16.mxu1 %v2827_v17  ;;  %v2224_v42 = vpop.permute.xlu0 %2223 }
 0x16a   : > { %2681 = vmatpush3.bf16.msra.mxu1 %v2827_v17 }
 0x16d   : > { %2675 = vmatmul.mubr.msk.bf16.gmra.mrb[4].mxu1 %vm758_vm10, %v2469_v23 }
 0x16e   : > { %2682 = vmatprep.mubr.msk.bf16.mxu1 %vm758_vm10, %v2488_v61 }
 0x175   : > { %2683 = vmatmul.mubr.msk.bf16.vlgmr.msra.gmra.mrb[0].mxu1 %vm758_vm10, %v2489_v52 }
 0x176   : > { %2686 = vmatprep.mubr.msk.bf16.mxu1 %vm758_vm10, %v2490_v50 }
 0x17d   : > { %2687 = vmatmul.mubr.msk.bf16.gmra.mrb[4].mxu1 %vm758_vm10, %v2491_v1 }
 0x22e   : > { %v2624_v27 = vpop.f32.mrb[8].mxu0 }
 0x22f   : > { %v1209_v20 = vpop.f32.mrb[9].mxu0 }
 0x230   : > { %v2625_v21 = vpop.f32.mrb[10].mxu0 }
 0x231   : > { %v1212_v22 = vpop.f32.mrb[11].mxu0 }
 0x236   : > { %v2628_v48 = vpop.f32.mrb[12].mxu0 }
 0x237   : > { %v1225_v15 = vpop.f32.mrb[13].mxu0 }
 0x238   : > { %v2629_v12 = vpop.f32.mrb[14].mxu0 }
 0x239   : > { %v1228_v26 = vpop.f32.mrb[15].mxu0 }
 0x248   : > { %v2684_v30 = vpop.f32.mrb[0].mxu1 }
 0x249   : > { %v2690_v32 = vadd.f32 %v2684_v30, %v2624_v27  ;;  %v2164_v33 = vpop.f32.mrb[1].mxu1 }
 0x24a   : > { %v2691_v46 = vadd.f32 %v2164_v33, %v1209_v20  ;;  %v2685_v25 = vpop.f32.mrb[2].mxu1 }
 0x24b   : > { %v2238_v35 = vsel %vm2235_vm15, %v2690_v32, %v2216_v47  ;;  %v2692_v60 = vadd.f32 %v2685_v25, %v2625_v21  ;;  %v2167_v17 = vpop.f32.mrb[3].mxu1 }
 0x24c   : > { %2247 = vst.msk [vmem:[%s3497_s17 + $0x10] sm:$0xff] %vm2244_vm0, %v2238_v35  ;;  %v2236_v13 = vsel %vm2235_vm15, %v2691_v46, %v2212_v29  ;;  %v2693_v36 = vadd.f32 %v2167_v17, %v1212_v22 }
 0x24d   : > { %2245 = vst.msk [vmem:[%s3497_s17] sm:$0xff] %vm2244_vm0, %v2236_v13  ;;  %v2239_v37 = vsel %vm2235_vm15, %v2692_v60, %v2218_v16 }
 0x24e   : > { %v2237_v38 = vsel %vm2235_vm15, %v2693_v36, %v2214_v59  ;;  %2248 = vst.msk [vmem:[%s3497_s17 + $0x18] sm:$0xff] %vm2244_vm0, %v2239_v37 }
 0x24f   : > { %2246 = vst.msk [vmem:[%s3497_s17 + $0x8] sm:$0xff] %vm2244_vm0, %v2237_v38 }
 0x250   : > { %v2688_v40 = vpop.f32.mrb[4].mxu1 }
 0x251   : > { %v2694_v19 = vadd.f32 %v2688_v40, %v2628_v48  ;;  %v2180_v5 = vpop.f32.mrb[5].mxu1 }
 0x252   : > { %v2695_v45 = vadd.f32 %v2180_v5, %v1225_v15  ;;  %v2689_v24 = vpop.f32.mrb[6].mxu1 }
 0x253   : > { %v2242_v8 = vsel %vm2235_vm15, %v2694_v19, %v2224_v42  ;;  %v2696_v53 = vadd.f32 %v2689_v24, %v2629_v12  ;;  %v2183_v43 = vpop.f32.mrb[7].mxu1 }
 0x254   : > { %v2240_v23 = vsel %vm2235_vm15, %v2695_v45, %v2220_v10  ;;  %2251 = vst.msk [vmem:[%s3497_s17 + $0x30] sm:$0xff] %vm2244_vm0, %v2242_v8  ;;  %v2697_v54 = vadd.f32 %v2183_v43, %v1228_v26 }
 0x255   : > { %2249 = vst.msk [vmem:[%s3497_s17 + $0x20] sm:$0xff] %vm2244_vm0, %v2240_v23  ;;  %v2243_v58 = vsel %vm2235_vm15, %v2696_v53, %v2226_v49 }
 0x256   : > { %v2241_v61 = vsel %vm2235_vm15, %v2697_v54, %v2222_v56  ;;  %2252 = vst.msk [vmem:[%s3497_s17 + $0x38] sm:$0xff] %vm2244_vm0, %v2243_v58 }
 0x257   : > { %2250 = vst.msk [vmem:[%s3497_s17 + $0x28] sm:$0xff] %vm2244_vm0, %v2241_v61 }
 0x258   : > { %2841 = shalt.err (!%p2838_p3)
}
 0x259   : > { %s2842_s13 = scalar_lea.hbm %s3519_s25, 1024  ;;  %s2846_s16 = scalar_lea.hbm %s3581_s6, 2048 }
 0x25a   : > { %p2843_p4 = scmp.ne.s32.totalorder %s3519_s25, %s2842_s13  ;;  %p2847_p9 = scmp.lt.u32.totalorder %s3519_s25, %s3581_s6 }
 0x25b   : > { %p2848_p10 = scmp.lt.u32.totalorder %s2846_s16, %s2842_s13  ;;  %p2850_p12 = scmp.lt.u32.totalorder %s2842_s13, %s3519_s25 }
 0x25c   : > { %p2844_p7 = pnand %p2843_p4, %p2969_p5 }
 0x25d   : > { %p2849_p11 = por %p2848_p10, %p2847_p9 }
 0x25e   : > { %p2845_p8 = pneg %p2844_p7 }
 0x25f   : > { %p2851_p13 = por %p2850_p12, %p2849_p11 }
 0x261   : > { %p2852_p0 = pnand %p2851_p13, %p2845_p8 }
 0x263   : > { %2855 = shalt.err (!%p2852_p0)
}
 0x264   : > { %s2895_s26 = smov 128  }
 0x265   : > { %2755 = dma.vmem_to_hbm [thread:$0]  (%p2969_p5), %s3524_s20, 1024, %s3519_s25, %s3533_s29, %s2895_s26, %s2895_s26, %s2893_s19  }
 0x266 PF: > { %p2761_p1 = scmp.ge.s32.totalorder %s2890_s24, 2  ;;  %s2282_s28 = sand.u32 1, %s2878_s21  }
 0x267   : > { %s2283_s9 = scalar_lea.sflag [#allocation4], %s2282_s28 }
 0x268   : > { %p2758_p2 = pnand %p2761_p1, %p2973_p6 }
 0x26a   : > { %2873 = dma.done.wait (!%p2758_p2), %s2283_s9, 1024  }
 0x26b   : > { %2875 = vsyncadd (!%p2758_p2), %s2283_s9, 4294966272  ;;  %p16_p3 = scmp.ge.s32.totalorder %s2956_s27, 4   ;;  %s3592_s21 = smov %s2882_s22 }
 0x26c   : > { %s3593_s22 = smov %s2886_s23  ;;  %s3594_s23 = smov %s2967_s30 }
 0x26d   : > { %s3595_s24 = smov %s2956_s27  ;;  %18 = sbr.rel (!%p16_p3) target bundleno = 3 (0x3), region = 89 }
 0x274   :  { %2288 = vsyncpa [#allocation4], 1 }
 0x275   :  { %2290 = vsyncpa [#allocation4 + $0x1], 1 }

</bundles_post_ra>
